<compile_context>
chip_gen: v6e
topology: v6e:2x2x1
jax: 0.10.0
libtpu: 0.0.40
codegen_flags: <defaults>
</compile_context>

<pallas_src>
import numpy as np

import jax
import jax.numpy as jnp
from jax import lax
from jax.experimental import pallas as pl
from jax.experimental.pallas import tpu as pltpu


# --------------------------------------------------------------------------- #
# Pallas kernel: the whole forward pass, single invocation, all in VMEM.
# --------------------------------------------------------------------------- #
def _net_kernel(p1_ref, w1_ref, b1_ref,
                w2_ref, b2_ref,
                w3_ref, b3_ref,
                wf1_ref, bf1_ref,
                wf2_ref, bf2_ref,
                o_ref,
                h1_ref, p2_ref, h2_ref, p3_ref):
    bf16 = jnp.bfloat16

    def dot(a, b):
        return jnp.dot(a, b, preferred_element_type=jnp.float32)

    # conv1 + ReLU: one (ntap2*B*OH2*OW2, Cin*64) @ (Cin*64, 32) matmul.
    # Rows were duplicated tap-major (wrapper side) so conv2's im2col block
    # can be assembled below with contiguous copies.
    h1_ref[...] = jnp.maximum(dot(p1_ref[...], w1_ref[...]) + b1_ref[...], 0.0)

    # Assemble conv2's im2col block (B*OH2*OW2, 16*32): 16 lane-block copies.
    R2, K2 = p2_ref.shape            # (B*9, 512)
    C1 = h1_ref.shape[1]             # 32
    for t in range(K2 // C1):        # 16 conv2 taps
        p2_ref[:, t * C1:(t + 1) * C1] = h1_ref[t * R2:(t + 1) * R2, :]

    # conv2 + ReLU: one (B*9, 512) @ (512, 64) matmul (MXU-internal K accum).
    h2_ref[...] = jnp.maximum(
        dot(p2_ref[...].astype(bf16), w2_ref[...]) + b2_ref[...], 0.0)

    # conv3 output is 1x1 spatial -> conv3 is a dense layer over the
    # flattened conv2 output: relayout (B*9, 64) -> (B, 576), one matmul.
    B, K3 = p3_ref.shape             # (B, 9*64)
    C2 = h2_ref.shape[1]             # 64
    for s in range(K3 // C2):        # 9 spatial positions
        p3_ref[:, s * C2:(s + 1) * C2] = h2_ref[s * B:(s + 1) * B, :]
    h3 = jnp.maximum(dot(p3_ref[...].astype(bf16), w3_ref[...]) + b3_ref[...], 0.0)

    # fc1 + ReLU, fc2 (output padded to 128 lanes -> unmasked dense store).
    h4 = jnp.maximum(dot(h3.astype(bf16), wf1_ref[...]) + bf1_ref[...], 0.0)
    o_ref[...] = dot(h4.astype(bf16), wf2_ref[...]) + bf2_ref[...]


def _full_spec(shape):
    nd = len(shape)
    return pl.BlockSpec(tuple(shape), lambda nd=nd: (0,) * nd)


# --------------------------------------------------------------------------- #
# Wrapper-side preparation (done once, outside the hot path).
# --------------------------------------------------------------------------- #
def _conv_geom(h, w, k, s):
    return (h - k) // s + 1, (w - k) // s + 1


def prepare_net(params, input_shape, batch):
    """Precompute kernel-side constants: bf16 weight re-layouts + gather idx."""
    c_in, H, W = input_shape
    B = batch
    OH1, OW1 = _conv_geom(H, W, 8, 4)
    OH2, OW2 = _conv_geom(OH1, OW1, 4, 2)
    OH3, OW3 = _conv_geom(OH2, OW2, 3, 1)
    if OH3 * OW3 != 1:
        # TODO(synk): frames where conv3's output is larger than 1x1 (e.g. 84x84)
        # need an extra NCHW flatten stage before fc1; not handled by this kernel.
        raise NotImplementedError("fused kernel assumes conv3 output is 1x1 spatial")

    bf16, f32 = jnp.bfloat16, jnp.float32
    p = {}

    # conv1: im2col weights (Cin*kh*kw, 32); /256 stays on the input side.
    w1 = params["c1_w"]
    p["w1"] = jnp.asarray(w1.reshape(w1.shape[0], -1).T, bf16)
    p["b1"] = params["c1_b"].reshape(1, -1).astype(f32)

    # conv2: single (kh*kw*Cin, Cout) im2col weight matrix, tap-major features.
    w2 = params["c2_w"]                                   # (64, 32, 4, 4)
    p["w2"] = jnp.asarray(jnp.transpose(w2, (2, 3, 1, 0)).reshape(-1, w2.shape[0]), bf16)
    p["b2"] = params["c2_b"].reshape(1, -1).astype(f32)

    # conv3 (1x1 output) == dense layer over (spatial, channel) features.
    w3 = params["c3_w"]                                   # (64, 64, 3, 3)
    p["w3"] = jnp.asarray(jnp.transpose(w3, (2, 3, 1, 0)).reshape(-1, w3.shape[0]), bf16)
    p["b3"] = params["c3_b"].reshape(1, -1).astype(f32)

    # fc1 (conv3 out is 1x1 -> NCHW flatten == channels), fc2 padded to 128 lanes.
    p["wf1"] = jnp.asarray(params["fc1_w"].T, bf16)
    p["bf1"] = params["fc1_b"].reshape(1, -1).astype(f32)
    n_act, n_fc1 = params["fc2_w"].shape
    n_pad = ((n_act + 127) // 128) * 128
    p["wf2"] = (jnp.zeros((n_fc1, n_pad), f32)
                .at[:, :n_act].set(params["fc2_w"].T.astype(f32))).astype(bf16)
    p["bf2"] = jnp.zeros((1, n_pad), f32).at[0, :n_act].set(params["fc2_b"].astype(f32))

    # Static gather indices: duplicate conv1-output rows per conv2 tap, dest
    # order (tap, (oh2, ow2), b) so the kernel's conv2/conv3 assemblies become
    # contiguous sublane reads.
    src = np.zeros((4 * 4, OH2 * OW2, B), np.int32)
    for i in range(4):
        for j in range(4):
            for oh in range(OH2):
                for ow in range(OW2):
                    for b in range(B):
                        src[i * 4 + j, oh * OW2 + ow, b] = \
                            (b * OH1 + 2 * oh + i) * OW1 + (2 * ow + j)
    p["src_rows"] = jnp.asarray(src.reshape(-1))
    return p


def _im2col(x, kh, kw, stride):
    # x: (B, C, H, W) -> (B*OH*OW, C*kh*kw); features ordered (C, kh, kw).
    B, C, H, W = x.shape
    OH = (H - kh) // stride + 1
    OW = (W - kw) // stride + 1
    cols = []
    for i in range(kh):
        for j in range(kw):
            cols.append(x[:, :, i:i + stride * OH:stride, j:j + stride * OW:stride])
    cols = jnp.stack(cols, axis=0).reshape(kh, kw, B, C, OH, OW)
    cols = cols.transpose(2, 4, 5, 3, 0, 1)  # (B, OH, OW, C, kh, kw)
    return cols.reshape(B * OH * OW, C * kh * kw)


def net_forward(prep, x, n_actions):
    """Fused forward: XLA-side conv1 patch gather + ONE Pallas call."""
    B, C, H, W = x.shape
    OH1, OW1 = _conv_geom(H, W, 8, 4)
    OH2, OW2 = _conv_geom(OH1, OW1, 4, 2)
    R2 = B * OH2 * OW2                      # conv2 output rows (18)

    fx = x.astype(jnp.float32) * (1.0 / 256.0)          # exact, bf16-safe values
    p1 = _im2col(fx, 8, 8, 4)                           # (B*OH1*OW1, C*64)
    p1 = jnp.take(p1, prep["src_rows"], axis=0).astype(jnp.bfloat16)  # (16*R2, C*64)

    C1 = prep["w1"].shape[1]                # 32
    C2 = prep["w2"].shape[1]                # 64
    K2 = prep["w2"].shape[0]                # 512
    K3 = prep["w3"].shape[0]                # 576
    nt2 = K2 // C1                          # 16 conv2 taps
    n_pad = prep["wf2"].shape[1]            # 128

    args = (p1, prep["w1"], prep["b1"],
            prep["w2"], prep["b2"],
            prep["w3"], prep["b3"],
            prep["wf1"], prep["bf1"],
            prep["wf2"], prep["bf2"])
    out = pl.pallas_call(
        _net_kernel,
        out_shape=jax.ShapeDtypeStruct((B, n_pad), jnp.float32),
        in_specs=[_full_spec(a.shape) for a in args],
        out_specs=_full_spec((B, n_pad)),
        scratch_shapes=[
            pltpu.VMEM((nt2 * R2, C1), jnp.float32),   # conv1 out (tap-major rows)
            pltpu.VMEM((R2, K2), jnp.float32),         # conv2 im2col block
            pltpu.VMEM((R2, C2), jnp.float32),         # conv2 out
            pltpu.VMEM((B, K3), jnp.float32),          # conv3/fc input row block
        ],
    )(*args)
    return out[:, :n_actions]


# --------------------------------------------------------------------------- #
# Parameter init (matches torch defaults for Conv2d/Linear: U(-1/sqrt(fan), ...))
# --------------------------------------------------------------------------- #
def init_params(key, input_shape, n_actions):
    c_in, H, W = input_shape

    def uniform(key, shape, fan_in):
        bound = 1.0 / jnp.sqrt(jnp.float32(fan_in))
        return jax.random.uniform(key, shape, jnp.float32, -bound, bound)

    ks = jax.random.split(key, 10)
    p = {}
    p["c1_w"] = uniform(ks[0], (32, c_in, 8, 8), c_in * 8 * 8)
    p["c1_b"] = uniform(ks[1], (32,), c_in * 8 * 8)
    p["c2_w"] = uniform(ks[2], (64, 32, 4, 4), 32 * 4 * 4)
    p["c2_b"] = uniform(ks[3], (64,), 32 * 4 * 4)
    p["c3_w"] = uniform(ks[4], (64, 64, 3, 3), 64 * 3 * 3)
    p["c3_b"] = uniform(ks[5], (64,), 64 * 3 * 3)

    oh, ow = _conv_geom(H, W, 8, 4)
    oh, ow = _conv_geom(oh, ow, 4, 2)
    oh, ow = _conv_geom(oh, ow, 3, 1)
    conv_out = 64 * oh * ow

    p["fc1_w"] = uniform(ks[6], (512, conv_out), conv_out)
    p["fc1_b"] = uniform(ks[7], (512,), conv_out)
    p["fc2_w"] = uniform(ks[8], (n_actions, 512), 512)
    p["fc2_b"] = uniform(ks[9], (n_actions,), 512)
    return p


# --------------------------------------------------------------------------- #
# Pure-JAX f32 reference (mirrors the PyTorch forward exactly).
# --------------------------------------------------------------------------- #
def reference_forward(params, x):
    fx = x.astype(jnp.float32) / 256.0

    def conv(h, w, b, s):
        y = lax.conv_general_dilated(h, w, (s, s), "VALID",
                                     dimension_numbers=("NCHW", "OIHW", "NCHW"))
        return jax.nn.relu(y + b.reshape(1, -1, 1, 1))

    h = conv(fx, params["c1_w"], params["c1_b"], 4)
    h = conv(h, params["c2_w"], params["c2_b"], 2)
    h = conv(h, params["c3_w"], params["c3_b"], 1)
    flat = h.reshape(h.shape[0], -1)
    h = jax.nn.relu(flat @ params["fc1_w"].T + params["fc1_b"])
    return h @ params["fc2_w"].T + params["fc2_b"]


# --------------------------------------------------------------------------- #
if __name__ == "__main__":
    key = jax.random.PRNGKey(0)
    k_param, k_x = jax.random.split(key)

    batch = 2
    input_shape = (4, 36, 36)   # smallest frame for which the conv stack is valid
    n_actions = 6

    params = init_params(k_param, input_shape, n_actions)
    # uint8 "pixel" input, like the raw observations fed to the torch Net
    x = jax.random.randint(k_x, (batch,) + input_shape, 0, 256, dtype=jnp.int32)
    x = x.astype(jnp.uint8)

    prep = prepare_net(params, input_shape, batch)
    apply_fn = jax.jit(net_forward, static_argnums=2)

    out = jax.block_until_ready(apply_fn(prep, x, n_actions))
    ref = jax.block_until_ready(reference_forward(params, x))

    assert out.shape == (batch, n_actions), out.shape
    # bf16 matmul operands (f32 accumulation) vs the pure-f32 reference.
    max_err = float(jnp.max(jnp.abs(out - ref)))
    assert jnp.allclose(out, ref, rtol=5e-2, atol=5e-3), (
        f"mismatch vs f32 JAX reference: max abs err = {max_err}"
    )
    print("KERNEL_OK")
</pallas_src>

<mosaic_0001>
module attributes {stable_mosaic.version = 11 : i64} {
  func.func @_net_kernel(%arg0: memref<288x256xbf16, #tpu.memory_space<vmem>>, %arg1: memref<256x32xbf16, #tpu.memory_space<vmem>>, %arg2: memref<1x32xf32, #tpu.memory_space<vmem>>, %arg3: memref<512x64xbf16, #tpu.memory_space<vmem>>, %arg4: memref<1x64xf32, #tpu.memory_space<vmem>>, %arg5: memref<576x64xbf16, #tpu.memory_space<vmem>>, %arg6: memref<1x64xf32, #tpu.memory_space<vmem>>, %arg7: memref<64x512xbf16, #tpu.memory_space<vmem>>, %arg8: memref<1x512xf32, #tpu.memory_space<vmem>>, %arg9: memref<512x128xbf16, #tpu.memory_space<vmem>>, %arg10: memref<1x128xf32, #tpu.memory_space<vmem>>, %arg11: memref<2x128xf32, #tpu.memory_space<vmem>>, %arg12: memref<288x32xf32, #tpu.memory_space<vmem>>, %arg13: memref<18x512xf32, #tpu.memory_space<vmem>>, %arg14: memref<18x64xf32, #tpu.memory_space<vmem>>, %arg15: memref<2x576xf32, #tpu.memory_space<vmem>>) attributes {dimension_semantics = [], scalar_prefetch = 0 : i64, scratch_operands = 4 : i64, tpu.core_type = #tpu.core_type<tc>} {
    %c0 = arith.constant 0 : index
    %c0_0 = arith.constant 0 : index
    %0 = vector.load %arg0[%c0, %c0_0] : memref<288x256xbf16, #tpu.memory_space<vmem>>, vector<288x256xbf16>
    %c0_1 = arith.constant 0 : index
    %c0_2 = arith.constant 0 : index
    %1 = vector.load %arg1[%c0_1, %c0_2] : memref<256x32xbf16, #tpu.memory_space<vmem>>, vector<256x32xbf16>
    %cst = arith.constant dense<0.000000e+00> : vector<288x32xf32>
    %2 = tpu.matmul %0, %1, %cst {dimension_numbers = #tpu.dot_dimension_numbers<[1], [0], [0], [1], [0, 0, 1, 1], [], []>} : vector<288x256xbf16>, vector<256x32xbf16>, vector<288x32xf32> -> vector<288x32xf32>
    %c0_3 = arith.constant 0 : index
    %c0_4 = arith.constant 0 : index
    %3 = vector.load %arg2[%c0_3, %c0_4] : memref<1x32xf32, #tpu.memory_space<vmem>>, vector<1x32xf32>
    %4 = vector.broadcast %3 : vector<1x32xf32> to vector<288x32xf32>
    %5 = arith.addf %2, %4 : vector<288x32xf32>
    %cst_5 = arith.constant 0.000000e+00 : f32
    %6 = vector.broadcast %cst_5 : f32 to vector<288x32xf32>
    %7 = arith.maximumf %5, %6 : vector<288x32xf32>
    %c0_6 = arith.constant 0 : index
    %c0_7 = arith.constant 0 : index
    %8 = vector.load %arg12[%c0_6, %c0_7] : memref<288x32xf32, #tpu.memory_space<vmem>>, vector<288x32xf32>
    tpu.vector_store %arg12[%c0_6, %c0_7], %7 {strides = array<i32>} : memref<288x32xf32, #tpu.memory_space<vmem>>, vector<288x32xf32>,
    %c0_8 = arith.constant 0 : index
    %c0_9 = arith.constant 0 : index
    %9 = vector.load %arg12[%c0_8, %c0_9] : memref<288x32xf32, #tpu.memory_space<vmem>>, vector<18x32xf32>
    %c0_10 = arith.constant 0 : index
    %c0_11 = arith.constant 0 : index
    %10 = vector.load %arg13[%c0_10, %c0_11] : memref<18x512xf32, #tpu.memory_space<vmem>>, vector<18x32xf32>
    tpu.vector_store %arg13[%c0_10, %c0_11], %9 {strides = array<i32>} : memref<18x512xf32, #tpu.memory_space<vmem>>, vector<18x32xf32>,
    %c18 = arith.constant 18 : index
    %c0_12 = arith.constant 0 : index
    %11 = vector.load %arg12[%c18, %c0_12] : memref<288x32xf32, #tpu.memory_space<vmem>>, vector<18x32xf32>
    %c0_13 = arith.constant 0 : index
    %c32 = arith.constant 32 : index
    %12 = vector.load %arg13[%c0_13, %c32] : memref<18x512xf32, #tpu.memory_space<vmem>>, vector<18x32xf32>
    tpu.vector_store %arg13[%c0_13, %c32], %11 {strides = array<i32>} : memref<18x512xf32, #tpu.memory_space<vmem>>, vector<18x32xf32>,
    %c36 = arith.constant 36 : index
    %c0_14 = arith.constant 0 : index
    %13 = vector.load %arg12[%c36, %c0_14] : memref<288x32xf32, #tpu.memory_space<vmem>>, vector<18x32xf32>
    %c0_15 = arith.constant 0 : index
    %c64 = arith.constant 64 : index
    %14 = vector.load %arg13[%c0_15, %c64] : memref<18x512xf32, #tpu.memory_space<vmem>>, vector<18x32xf32>
    tpu.vector_store %arg13[%c0_15, %c64], %13 {strides = array<i32>} : memref<18x512xf32, #tpu.memory_space<vmem>>, vector<18x32xf32>,
    %c54 = arith.constant 54 : index
    %c0_16 = arith.constant 0 : index
    %15 = vector.load %arg12[%c54, %c0_16] : memref<288x32xf32, #tpu.memory_space<vmem>>, vector<18x32xf32>
    %c0_17 = arith.constant 0 : index
    %c96 = arith.constant 96 : index
    %16 = vector.load %arg13[%c0_17, %c96] : memref<18x512xf32, #tpu.memory_space<vmem>>, vector<18x32xf32>
    tpu.vector_store %arg13[%c0_17, %c96], %15 {strides = array<i32>} : memref<18x512xf32, #tpu.memory_space<vmem>>, vector<18x32xf32>,
    %c72 = arith.constant 72 : index
    %c0_18 = arith.constant 0 : index
    %17 = vector.load %arg12[%c72, %c0_18] : memref<288x32xf32, #tpu.memory_space<vmem>>, vector<18x32xf32>
    %c0_19 = arith.constant 0 : index
    %c128 = arith.constant 128 : index
    %18 = vector.load %arg13[%c0_19, %c128] : memref<18x512xf32, #tpu.memory_space<vmem>>, vector<18x32xf32>
    tpu.vector_store %arg13[%c0_19, %c128], %17 {strides = array<i32>} : memref<18x512xf32, #tpu.memory_space<vmem>>, vector<18x32xf32>,
    %c90 = arith.constant 90 : index
    %c0_20 = arith.constant 0 : index
    %19 = vector.load %arg12[%c90, %c0_20] : memref<288x32xf32, #tpu.memory_space<vmem>>, vector<18x32xf32>
    %c0_21 = arith.constant 0 : index
    %c160 = arith.constant 160 : index
    %20 = vector.load %arg13[%c0_21, %c160] : memref<18x512xf32, #tpu.memory_space<vmem>>, vector<18x32xf32>
    tpu.vector_store %arg13[%c0_21, %c160], %19 {strides = array<i32>} : memref<18x512xf32, #tpu.memory_space<vmem>>, vector<18x32xf32>,
    %c108 = arith.constant 108 : index
    %c0_22 = arith.constant 0 : index
    %21 = vector.load %arg12[%c108, %c0_22] : memref<288x32xf32, #tpu.memory_space<vmem>>, vector<18x32xf32>
    %c0_23 = arith.constant 0 : index
    %c192 = arith.constant 192 : index
    %22 = vector.load %arg13[%c0_23, %c192] : memref<18x512xf32, #tpu.memory_space<vmem>>, vector<18x32xf32>
    tpu.vector_store %arg13[%c0_23, %c192], %21 {strides = array<i32>} : memref<18x512xf32, #tpu.memory_space<vmem>>, vector<18x32xf32>,
    %c126 = arith.constant 126 : index
    %c0_24 = arith.constant 0 : index
    %23 = vector.load %arg12[%c126, %c0_24] : memref<288x32xf32, #tpu.memory_space<vmem>>, vector<18x32xf32>
    %c0_25 = arith.constant 0 : index
    %c224 = arith.constant 224 : index
    %24 = vector.load %arg13[%c0_25, %c224] : memref<18x512xf32, #tpu.memory_space<vmem>>, vector<18x32xf32>
    tpu.vector_store %arg13[%c0_25, %c224], %23 {strides = array<i32>} : memref<18x512xf32, #tpu.memory_space<vmem>>, vector<18x32xf32>,
    %c144 = arith.constant 144 : index
    %c0_26 = arith.constant 0 : index
    %25 = vector.load %arg12[%c144, %c0_26] : memref<288x32xf32, #tpu.memory_space<vmem>>, vector<18x32xf32>
    %c0_27 = arith.constant 0 : index
    %c256 = arith.constant 256 : index
    %26 = vector.load %arg13[%c0_27, %c256] : memref<18x512xf32, #tpu.memory_space<vmem>>, vector<18x32xf32>
    tpu.vector_store %arg13[%c0_27, %c256], %25 {strides = array<i32>} : memref<18x512xf32, #tpu.memory_space<vmem>>, vector<18x32xf32>,
    %c162 = arith.constant 162 : index
    %c0_28 = arith.constant 0 : index
    %27 = vector.load %arg12[%c162, %c0_28] : memref<288x32xf32, #tpu.memory_space<vmem>>, vector<18x32xf32>
    %c0_29 = arith.constant 0 : index
    %c288 = arith.constant 288 : index
    %28 = vector.load %arg13[%c0_29, %c288] : memref<18x512xf32, #tpu.memory_space<vmem>>, vector<18x32xf32>
    tpu.vector_store %arg13[%c0_29, %c288], %27 {strides = array<i32>} : memref<18x512xf32, #tpu.memory_space<vmem>>, vector<18x32xf32>,
    %c180 = arith.constant 180 : index
    %c0_30 = arith.constant 0 : index
    %29 = vector.load %arg12[%c180, %c0_30] : memref<288x32xf32, #tpu.memory_space<vmem>>, vector<18x32xf32>
    %c0_31 = arith.constant 0 : index
    %c320 = arith.constant 320 : index
    %30 = vector.load %arg13[%c0_31, %c320] : memref<18x512xf32, #tpu.memory_space<vmem>>, vector<18x32xf32>
    tpu.vector_store %arg13[%c0_31, %c320], %29 {strides = array<i32>} : memref<18x512xf32, #tpu.memory_space<vmem>>, vector<18x32xf32>,
    %c198 = arith.constant 198 : index
    %c0_32 = arith.constant 0 : index
    %31 = vector.load %arg12[%c198, %c0_32] : memref<288x32xf32, #tpu.memory_space<vmem>>, vector<18x32xf32>
    %c0_33 = arith.constant 0 : index
    %c352 = arith.constant 352 : index
    %32 = vector.load %arg13[%c0_33, %c352] : memref<18x512xf32, #tpu.memory_space<vmem>>, vector<18x32xf32>
    tpu.vector_store %arg13[%c0_33, %c352], %31 {strides = array<i32>} : memref<18x512xf32, #tpu.memory_space<vmem>>, vector<18x32xf32>,
    %c216 = arith.constant 216 : index
    %c0_34 = arith.constant 0 : index
    %33 = vector.load %arg12[%c216, %c0_34] : memref<288x32xf32, #tpu.memory_space<vmem>>, vector<18x32xf32>
    %c0_35 = arith.constant 0 : index
    %c384 = arith.constant 384 : index
    %34 = vector.load %arg13[%c0_35, %c384] : memref<18x512xf32, #tpu.memory_space<vmem>>, vector<18x32xf32>
    tpu.vector_store %arg13[%c0_35, %c384], %33 {strides = array<i32>} : memref<18x512xf32, #tpu.memory_space<vmem>>, vector<18x32xf32>,
    %c234 = arith.constant 234 : index
    %c0_36 = arith.constant 0 : index
    %35 = vector.load %arg12[%c234, %c0_36] : memref<288x32xf32, #tpu.memory_space<vmem>>, vector<18x32xf32>
    %c0_37 = arith.constant 0 : index
    %c416 = arith.constant 416 : index
    %36 = vector.load %arg13[%c0_37, %c416] : memref<18x512xf32, #tpu.memory_space<vmem>>, vector<18x32xf32>
    tpu.vector_store %arg13[%c0_37, %c416], %35 {strides = array<i32>} : memref<18x512xf32, #tpu.memory_space<vmem>>, vector<18x32xf32>,
    %c252 = arith.constant 252 : index
    %c0_38 = arith.constant 0 : index
    %37 = vector.load %arg12[%c252, %c0_38] : memref<288x32xf32, #tpu.memory_space<vmem>>, vector<18x32xf32>
    %c0_39 = arith.constant 0 : index
    %c448 = arith.constant 448 : index
    %38 = vector.load %arg13[%c0_39, %c448] : memref<18x512xf32, #tpu.memory_space<vmem>>, vector<18x32xf32>
    tpu.vector_store %arg13[%c0_39, %c448], %37 {strides = array<i32>} : memref<18x512xf32, #tpu.memory_space<vmem>>, vector<18x32xf32>,
    %c270 = arith.constant 270 : index
    %c0_40 = arith.constant 0 : index
    %39 = vector.load %arg12[%c270, %c0_40] : memref<288x32xf32, #tpu.memory_space<vmem>>, vector<18x32xf32>
    %c0_41 = arith.constant 0 : index
    %c480 = arith.constant 480 : index
    %40 = vector.load %arg13[%c0_41, %c480] : memref<18x512xf32, #tpu.memory_space<vmem>>, vector<18x32xf32>
    tpu.vector_store %arg13[%c0_41, %c480], %39 {strides = array<i32>} : memref<18x512xf32, #tpu.memory_space<vmem>>, vector<18x32xf32>,
    %c0_42 = arith.constant 0 : index
    %c0_43 = arith.constant 0 : index
    %41 = vector.load %arg13[%c0_42, %c0_43] : memref<18x512xf32, #tpu.memory_space<vmem>>, vector<18x512xf32>
    %42 = arith.truncf %41 : vector<18x512xf32> to vector<18x512xbf16>
    %c0_44 = arith.constant 0 : index
    %c0_45 = arith.constant 0 : index
    %43 = vector.load %arg3[%c0_44, %c0_45] : memref<512x64xbf16, #tpu.memory_space<vmem>>, vector<512x64xbf16>
    %cst_46 = arith.constant dense<0.000000e+00> : vector<18x64xf32>
    %44 = tpu.matmul %42, %43, %cst_46 {dimension_numbers = #tpu.dot_dimension_numbers<[1], [0], [0], [1], [0, 0, 1, 1], [], []>} : vector<18x512xbf16>, vector<512x64xbf16>, vector<18x64xf32> -> vector<18x64xf32>
    %c0_47 = arith.constant 0 : index
    %c0_48 = arith.constant 0 : index
    %45 = vector.load %arg4[%c0_47, %c0_48] : memref<1x64xf32, #tpu.memory_space<vmem>>, vector<1x64xf32>
    %46 = vector.broadcast %45 : vector<1x64xf32> to vector<18x64xf32>
    %47 = arith.addf %44, %46 : vector<18x64xf32>
    %cst_49 = arith.constant 0.000000e+00 : f32
    %48 = vector.broadcast %cst_49 : f32 to vector<18x64xf32>
    %49 = arith.maximumf %47, %48 : vector<18x64xf32>
    %c0_50 = arith.constant 0 : index
    %c0_51 = arith.constant 0 : index
    %50 = vector.load %arg14[%c0_50, %c0_51] : memref<18x64xf32, #tpu.memory_space<vmem>>, vector<18x64xf32>
    tpu.vector_store %arg14[%c0_50, %c0_51], %49 {strides = array<i32>} : memref<18x64xf32, #tpu.memory_space<vmem>>, vector<18x64xf32>,
    %c0_52 = arith.constant 0 : index
    %c0_53 = arith.constant 0 : index
    %51 = vector.load %arg14[%c0_52, %c0_53] : memref<18x64xf32, #tpu.memory_space<vmem>>, vector<2x64xf32>
    %c0_54 = arith.constant 0 : index
    %c0_55 = arith.constant 0 : index
    %52 = vector.load %arg15[%c0_54, %c0_55] : memref<2x576xf32, #tpu.memory_space<vmem>>, vector<2x64xf32>
    tpu.vector_store %arg15[%c0_54, %c0_55], %51 {strides = array<i32>} : memref<2x576xf32, #tpu.memory_space<vmem>>, vector<2x64xf32>,
    %c2 = arith.constant 2 : index
    %c0_56 = arith.constant 0 : index
    %53 = vector.load %arg14[%c2, %c0_56] : memref<18x64xf32, #tpu.memory_space<vmem>>, vector<2x64xf32>
    %c0_57 = arith.constant 0 : index
    %c64_58 = arith.constant 64 : index
    %54 = vector.load %arg15[%c0_57, %c64_58] : memref<2x576xf32, #tpu.memory_space<vmem>>, vector<2x64xf32>
    tpu.vector_store %arg15[%c0_57, %c64_58], %53 {strides = array<i32>} : memref<2x576xf32, #tpu.memory_space<vmem>>, vector<2x64xf32>,
    %c4 = arith.constant 4 : index
    %c0_59 = arith.constant 0 : index
    %55 = vector.load %arg14[%c4, %c0_59] : memref<18x64xf32, #tpu.memory_space<vmem>>, vector<2x64xf32>
    %c0_60 = arith.constant 0 : index
    %c128_61 = arith.constant 128 : index
    %56 = vector.load %arg15[%c0_60, %c128_61] : memref<2x576xf32, #tpu.memory_space<vmem>>, vector<2x64xf32>
    tpu.vector_store %arg15[%c0_60, %c128_61], %55 {strides = array<i32>} : memref<2x576xf32, #tpu.memory_space<vmem>>, vector<2x64xf32>,
    %c6 = arith.constant 6 : index
    %c0_62 = arith.constant 0 : index
    %57 = vector.load %arg14[%c6, %c0_62] : memref<18x64xf32, #tpu.memory_space<vmem>>, vector<2x64xf32>
    %c0_63 = arith.constant 0 : index
    %c192_64 = arith.constant 192 : index
    %58 = vector.load %arg15[%c0_63, %c192_64] : memref<2x576xf32, #tpu.memory_space<vmem>>, vector<2x64xf32>
    tpu.vector_store %arg15[%c0_63, %c192_64], %57 {strides = array<i32>} : memref<2x576xf32, #tpu.memory_space<vmem>>, vector<2x64xf32>,
    %c8 = arith.constant 8 : index
    %c0_65 = arith.constant 0 : index
    %59 = vector.load %arg14[%c8, %c0_65] : memref<18x64xf32, #tpu.memory_space<vmem>>, vector<2x64xf32>
    %c0_66 = arith.constant 0 : index
    %c256_67 = arith.constant 256 : index
    %60 = vector.load %arg15[%c0_66, %c256_67] : memref<2x576xf32, #tpu.memory_space<vmem>>, vector<2x64xf32>
    tpu.vector_store %arg15[%c0_66, %c256_67], %59 {strides = array<i32>} : memref<2x576xf32, #tpu.memory_space<vmem>>, vector<2x64xf32>,
    %c10 = arith.constant 10 : index
    %c0_68 = arith.constant 0 : index
    %61 = vector.load %arg14[%c10, %c0_68] : memref<18x64xf32, #tpu.memory_space<vmem>>, vector<2x64xf32>
    %c0_69 = arith.constant 0 : index
    %c320_70 = arith.constant 320 : index
    %62 = vector.load %arg15[%c0_69, %c320_70] : memref<2x576xf32, #tpu.memory_space<vmem>>, vector<2x64xf32>
    tpu.vector_store %arg15[%c0_69, %c320_70], %61 {strides = array<i32>} : memref<2x576xf32, #tpu.memory_space<vmem>>, vector<2x64xf32>,
    %c12 = arith.constant 12 : index
    %c0_71 = arith.constant 0 : index
    %63 = vector.load %arg14[%c12, %c0_71] : memref<18x64xf32, #tpu.memory_space<vmem>>, vector<2x64xf32>
    %c0_72 = arith.constant 0 : index
    %c384_73 = arith.constant 384 : index
    %64 = vector.load %arg15[%c0_72, %c384_73] : memref<2x576xf32, #tpu.memory_space<vmem>>, vector<2x64xf32>
    tpu.vector_store %arg15[%c0_72, %c384_73], %63 {strides = array<i32>} : memref<2x576xf32, #tpu.memory_space<vmem>>, vector<2x64xf32>,
    %c14 = arith.constant 14 : index
    %c0_74 = arith.constant 0 : index
    %65 = vector.load %arg14[%c14, %c0_74] : memref<18x64xf32, #tpu.memory_space<vmem>>, vector<2x64xf32>
    %c0_75 = arith.constant 0 : index
    %c448_76 = arith.constant 448 : index
    %66 = vector.load %arg15[%c0_75, %c448_76] : memref<2x576xf32, #tpu.memory_space<vmem>>, vector<2x64xf32>
    tpu.vector_store %arg15[%c0_75, %c448_76], %65 {strides = array<i32>} : memref<2x576xf32, #tpu.memory_space<vmem>>, vector<2x64xf32>,
    %c16 = arith.constant 16 : index
    %c0_77 = arith.constant 0 : index
    %67 = vector.load %arg14[%c16, %c0_77] : memref<18x64xf32, #tpu.memory_space<vmem>>, vector<2x64xf32>
    %c0_78 = arith.constant 0 : index
    %c512 = arith.constant 512 : index
    %68 = vector.load %arg15[%c0_78, %c512] : memref<2x576xf32, #tpu.memory_space<vmem>>, vector<2x64xf32>
    tpu.vector_store %arg15[%c0_78, %c512], %67 {strides = array<i32>} : memref<2x576xf32, #tpu.memory_space<vmem>>, vector<2x64xf32>,
    %c0_79 = arith.constant 0 : index
    %c0_80 = arith.constant 0 : index
    %69 = vector.load %arg15[%c0_79, %c0_80] : memref<2x576xf32, #tpu.memory_space<vmem>>, vector<2x576xf32>
    %70 = arith.truncf %69 : vector<2x576xf32> to vector<2x576xbf16>
    %c0_81 = arith.constant 0 : index
    %c0_82 = arith.constant 0 : index
    %71 = vector.load %arg5[%c0_81, %c0_82] : memref<576x64xbf16, #tpu.memory_space<vmem>>, vector<576x64xbf16>
    %cst_83 = arith.constant dense<0.000000e+00> : vector<2x64xf32>
    %72 = tpu.matmul %70, %71, %cst_83 {dimension_numbers = #tpu.dot_dimension_numbers<[1], [0], [0], [1], [0, 0, 1, 1], [], []>} : vector<2x576xbf16>, vector<576x64xbf16>, vector<2x64xf32> -> vector<2x64xf32>
    %c0_84 = arith.constant 0 : index
    %c0_85 = arith.constant 0 : index
    %73 = vector.load %arg6[%c0_84, %c0_85] : memref<1x64xf32, #tpu.memory_space<vmem>>, vector<1x64xf32>
    %74 = vector.broadcast %73 : vector<1x64xf32> to vector<2x64xf32>
    %75 = arith.addf %72, %74 : vector<2x64xf32>
    %cst_86 = arith.constant 0.000000e+00 : f32
    %76 = vector.broadcast %cst_86 : f32 to vector<2x64xf32>
    %77 = arith.maximumf %75, %76 : vector<2x64xf32>
    %78 = arith.truncf %77 : vector<2x64xf32> to vector<2x64xbf16>
    %c0_87 = arith.constant 0 : index
    %c0_88 = arith.constant 0 : index
    %79 = vector.load %arg7[%c0_87, %c0_88] : memref<64x512xbf16, #tpu.memory_space<vmem>>, vector<64x512xbf16>
    %cst_89 = arith.constant dense<0.000000e+00> : vector<2x512xf32>
    %80 = tpu.matmul %78, %79, %cst_89 {dimension_numbers = #tpu.dot_dimension_numbers<[1], [0], [0], [1], [0, 0, 1, 1], [], []>} : vector<2x64xbf16>, vector<64x512xbf16>, vector<2x512xf32> -> vector<2x512xf32>
    %c0_90 = arith.constant 0 : index
    %c0_91 = arith.constant 0 : index
    %81 = vector.load %arg8[%c0_90, %c0_91] : memref<1x512xf32, #tpu.memory_space<vmem>>, vector<1x512xf32>
    %82 = vector.broadcast %81 : vector<1x512xf32> to vector<2x512xf32>
    %83 = arith.addf %80, %82 : vector<2x512xf32>
    %cst_92 = arith.constant 0.000000e+00 : f32
    %84 = vector.broadcast %cst_92 : f32 to vector<2x512xf32>
    %85 = arith.maximumf %83, %84 : vector<2x512xf32>
    %86 = arith.truncf %85 : vector<2x512xf32> to vector<2x512xbf16>
    %c0_93 = arith.constant 0 : index
    %c0_94 = arith.constant 0 : index
    %87 = vector.load %arg9[%c0_93, %c0_94] : memref<512x128xbf16, #tpu.memory_space<vmem>>, vector<512x128xbf16>
    %cst_95 = arith.constant dense<0.000000e+00> : vector<2x128xf32>
    %88 = tpu.matmul %86, %87, %cst_95 {dimension_numbers = #tpu.dot_dimension_numbers<[1], [0], [0], [1], [0, 0, 1, 1], [], []>} : vector<2x512xbf16>, vector<512x128xbf16>, vector<2x128xf32> -> vector<2x128xf32>
    %c0_96 = arith.constant 0 : index
    %c0_97 = arith.constant 0 : index
    %89 = vector.load %arg10[%c0_96, %c0_97] : memref<1x128xf32, #tpu.memory_space<vmem>>, vector<1x128xf32>
    %90 = vector.broadcast %89 : vector<1x128xf32> to vector<2x128xf32>
    %91 = arith.addf %88, %90 : vector<2x128xf32>
    %c0_98 = arith.constant 0 : index
    %c0_99 = arith.constant 0 : index
    %92 = vector.load %arg11[%c0_98, %c0_99] : memref<2x128xf32, #tpu.memory_space<vmem>>, vector<2x128xf32>
    tpu.vector_store %arg11[%c0_98, %c0_99], %91 {strides = array<i32>} : memref<2x128xf32, #tpu.memory_space<vmem>>, vector<2x128xf32>,
    return
  }
}

</mosaic_0001>

<bundles_post_ra>
// kernel: net_forward.1
= control target key start
LH: loop header
LB: loop body
LE: loop exit
PB: predicated region body
PF: predicated region fallthrough
CT: control target
= control target key end

     0   :  { %v2931_v1 = vmov 0   ;;  %s3719_s0 = inlined_call_operand.vmem [shape: bf16[288,256], index: 0, kind: input, shape index: {}]   ;;  %s3720_s1 = inlined_call_operand.vmem [shape: bf16[256,32], index: 1, kind: input, shape index: {}]   ;;  %s3721_s2 = inlined_call_operand.vmem [shape: f32[1,32], index: 2, kind: input, shape index: {}]   ;;  %s3722_s3 = inlined_call_operand.vmem [shape: bf16[512,64], index: 3, kind: input, shape index: {}]   ;;  %s3723_s4 = inlined_call_operand.vmem [shape: f32[1,64], index: 4, kind: input, shape index: {}]   ;;  %s3724_s5 = inlined_call_operand.vmem [shape: bf16[576,64], index: 5, kind: input, shape index: {}]   ;;  %s3725_s6 = inlined_call_operand.vmem [shape: f32[1,64], index: 6, kind: input, shape index: {}]   ;;  %s3726_s7 = inlined_call_operand.vmem [shape: bf16[64,512], index: 7, kind: input, shape index: {}]   ;;  %s3727_s8 = inlined_call_operand.vmem [shape: f32[1,512], index: 8, kind: input, shape index: {}]   ;;  %s3728_s9 = inlined_call_operand.vmem [shape: bf16[512,128], index: 9, kind: input, shape index: {}]   ;;  %s3729_s10 = inlined_call_operand.vmem [shape: f32[1,128], index: 10, kind: input, shape index: {}]   ;;  %s3730_s11 = inlined_call_operand.hbm [shape: f32[2,128], index: 11, kind: output, shape index: {}]  }
   0x1   :  { %v2714_v0 = vld [vmem:[%s3720_s1 + $0x38] sm:$0xff]   ;;  %391 = vmatprep.subr.bf16.mxu0 %v2931_v1  ;;  %v2715_v2 = vld [vmem:[%s3720_s1 + $0x30] sm:$0xff]   ;;  %v2716_v3 = vld [vmem:[%s3720_s1 + $0x28] sm:$0xff]  }
   0x2   :  { %392 = vmatpush1.bf16.msra.mxu0 %v2714_v0  ;;  %v2717_v4 = vld [vmem:[%s3720_s1 + $0x20] sm:$0xff]   ;;  %v2718_v5 = vld [vmem:[%s3720_s1 + $0x18] sm:$0xff]   ;;  %v2719_v7 = vld [vmem:[%s3720_s1 + $0x10] sm:$0xff]  }
   0x3   :  { %393 = vmatprep.subr.bf16.mxu0 %v2931_v1  ;;  %v2732_v6 = vld [vmem:[%s3719_s0 + $0x4] ss:$8 sps:$4 sm:$0xff]   ;;  %v2722_v10 = vld [vmem:[%s3720_s1 + $0x78] sm:$0xff]   ;;  %v2723_v11 = vld [vmem:[%s3720_s1 + $0x70] sm:$0xff]  }
   0x4   :  { %423 = vmatprep.mubr.bf16.mxu0 %v2732_v6  ;;  %v2720_v8 = vld [vmem:[%s3720_s1 + $0x8] sm:$0xff]   ;;  %v2721_v9 = vld [vmem:[%s3720_s1] sm:$0xff]   ;;  %v2726_v14 = vld [vmem:[%s3720_s1 + $0x58] sm:$0xff]  }
   0x5   :  { %v2724_v12 = vld [vmem:[%s3720_s1 + $0x68] sm:$0xff]   ;;  %v2725_v13 = vld [vmem:[%s3720_s1 + $0x60] sm:$0xff]   ;;  %v2727_v15 = vld [vmem:[%s3720_s1 + $0x50] sm:$0xff]  }
   0x6   :  { %394 = vmatpush1.bf16.msra.mxu0 %v2715_v2  ;;  %v2728_v16 = vld [vmem:[%s3720_s1 + $0x48] sm:$0xff]   ;;  %v2729_v17 = vld [vmem:[%s3720_s1 + $0x40] sm:$0xff]   ;;  %v2733_v19 = vld [vmem:[%s3719_s0 + $0x14] ss:$8 sps:$4 sm:$0xff]  }
   0x7   :  { %395 = vmatprep.subr.bf16.mxu0 %v2931_v1  ;;  %v2730_v18 = vld [vmem:[%s3719_s0] ss:$8 sps:$4 sm:$0xff]   ;;  %v2735_v20 = vld [vmem:[%s3719_s0 + $0x10] ss:$8 sps:$4 sm:$0xff]   ;;  %v2736_v21 = vld [vmem:[%s3719_s0 + $0x24] ss:$8 sps:$4 sm:$0xff]  }
   0x8   :  { %v2738_v22 = vld [vmem:[%s3719_s0 + $0x20] ss:$8 sps:$4 sm:$0xff]   ;;  %v2739_v23 = vld [vmem:[%s3719_s0 + $0x34] ss:$8 sps:$4 sm:$0xff]   ;;  %v2741_v24 = vld [vmem:[%s3719_s0 + $0x30] ss:$8 sps:$4 sm:$0xff]  }
   0x9   :  { %v2742_v25 = vld [vmem:[%s3719_s0 + $0x44] ss:$8 sps:$4 sm:$0xff]   ;;  %v2744_v26 = vld [vmem:[%s3719_s0 + $0x40] ss:$8 sps:$4 sm:$0xff]   ;;  %v2745_v27 = vld [vmem:[%s3719_s0 + $0x54] ss:$8 sps:$4 sm:$0xff]  }
   0xa   :  { %396 = vmatpush1.bf16.msra.mxu0 %v2716_v3  ;;  %v2747_v28 = vld [vmem:[%s3719_s0 + $0x50] ss:$8 sps:$4 sm:$0xff]   ;;  %v2748_v29 = vld [vmem:[%s3719_s0 + $0x64] ss:$8 sps:$4 sm:$0xff]   ;;  %v2750_v30 = vld [vmem:[%s3719_s0 + $0x60] ss:$8 sps:$4 sm:$0xff]  }
   0xb   :  { %397 = vmatprep.subr.bf16.mxu0 %v2931_v1  ;;  %v2751_v31 = vld [vmem:[%s3719_s0 + $0x74] ss:$8 sps:$4 sm:$0xff]  }
   0xe   :  { %398 = vmatpush1.bf16.msra.mxu0 %v2717_v4 }
   0xf   :  { %399 = vmatprep.subr.bf16.mxu0 %v2931_v1 }
  0x12   :  { %400 = vmatpush1.bf16.msra.mxu0 %v2718_v5 }
  0x13   :  { %401 = vmatprep.subr.bf16.mxu0 %v2931_v1 }
  0x16   :  { %402 = vmatpush1.bf16.msra.mxu0 %v2719_v7 }
  0x17   :  { %403 = vmatprep.subr.bf16.mxu0 %v2931_v1 }
  0x1a   :  { %404 = vmatpush1.bf16.msra.mxu0 %v2720_v8 }
  0x1b   :  { %405 = vmatprep.subr.bf16.mxu0 %v2931_v1 }
  0x1e   :  { %406 = vmatpush1.bf16.msra.mxu0 %v2721_v9 }
  0x1f   :  { %407 = vmatprep.subr.bf16.mxu0 %v2931_v1 }
  0x22   :  { %408 = vmatpush2.bf16.msra.mxu0 %v2722_v10 }
  0x23   :  { %409 = vmatprep.subr.bf16.mxu0 %v2931_v1 }
  0x26   :  { %410 = vmatpush2.bf16.msra.mxu0 %v2723_v11 }
  0x27   :  { %411 = vmatprep.subr.bf16.mxu0 %v2931_v1 }
  0x2a   :  { %412 = vmatpush2.bf16.msra.mxu0 %v2724_v12 }
  0x2b   :  { %413 = vmatprep.subr.bf16.mxu0 %v2931_v1 }
  0x2e   :  { %414 = vmatpush2.bf16.msra.mxu0 %v2725_v13 }
  0x2f   :  { %415 = vmatprep.subr.bf16.mxu0 %v2931_v1 }
  0x32   :  { %416 = vmatpush2.bf16.msra.mxu0 %v2726_v14 }
  0x33   :  { %417 = vmatprep.subr.bf16.mxu0 %v2931_v1 }
  0x36   :  { %418 = vmatpush2.bf16.msra.mxu0 %v2727_v15 }
  0x37   :  { %419 = vmatprep.subr.bf16.mxu0 %v2931_v1 }
  0x3a   :  { %420 = vmatpush2.bf16.msra.mxu0 %v2728_v16 }
  0x3b   :  { %421 = vmatprep.subr.bf16.mxu0 %v2931_v1 }
  0x3e   :  { %422 = vmatpush2.bf16.msra.mxu0 %v2729_v17 }
  0x41   :  { %424 = vmatmul.mubr.bf16.vlgmr.msra.gmra.mxu0 %v2730_v18 }
  0x42   :  { %431 = vmatprep.mubr.bf16.mxu0 %v2733_v19 }
  0x49   :  { %432 = vmatmul.mubr.bf16.gmra.mxu0 %v2735_v20 }
  0x4a   :  { %439 = vmatprep.mubr.bf16.mxu0 %v2736_v21 }
  0x51   :  { %440 = vmatmul.mubr.bf16.gmra.mxu0 %v2738_v22 }
  0x52   :  { %447 = vmatprep.mubr.bf16.mxu0 %v2739_v23 }
  0x59   :  { %448 = vmatmul.mubr.bf16.gmra.mxu0 %v2741_v24 }
  0x5a   :  { %455 = vmatprep.mubr.bf16.mxu0 %v2742_v25 }
  0x61   :  { %456 = vmatmul.mubr.bf16.gmra.mxu0 %v2744_v26 }
  0x62   :  { %463 = vmatprep.mubr.bf16.mxu0 %v2745_v27 }
  0x69   :  { %464 = vmatmul.mubr.bf16.gmra.mxu0 %v2747_v28 }
  0x6a   :  { %471 = vmatprep.mubr.bf16.mxu0 %v2748_v29 }
  0x6b   :  { %16 = vsyncpa [#allocation7], 0  ;;  %v2753_v32 = vld [vmem:[%s3719_s0 + $0x70] ss:$8 sps:$4 sm:$0xff]   ;;  %v2754_v33 = vld [vmem:[%s3719_s0 + $0x84] ss:$8 sps:$4 sm:$0xff]  }
  0x6c   :  { %v2756_v34 = vld [vmem:[%s3719_s0 + $0x80] ss:$8 sps:$4 sm:$0xff]   ;;  %v2757_v35 = vld [vmem:[%s3719_s0 + $0x94] ss:$8 sps:$4 sm:$0xff]   ;;  %v2759_v36 = vld [vmem:[%s3719_s0 + $0x90] ss:$8 sps:$4 sm:$0xff]  }
  0x6d   :  { %v2760_v37 = vld [vmem:[%s3719_s0 + $0xa4] ss:$8 sps:$4 sm:$0xff]   ;;  %v2762_v38 = vld [vmem:[%s3719_s0 + $0xa0] ss:$8 sps:$4 sm:$0xff]   ;;  %v2763_v39 = vld [vmem:[%s3719_s0 + $0xb4] ss:$8 sps:$4 sm:$0xff]  }
  0x6e   :  { %v2765_v40 = vld [vmem:[%s3719_s0 + $0xb0] ss:$8 sps:$4 sm:$0xff]   ;;  %v2766_v41 = vld [vmem:[%s3719_s0 + $0xc4] ss:$8 sps:$4 sm:$0xff]   ;;  %v2768_v42 = vld [vmem:[%s3719_s0 + $0xc0] ss:$8 sps:$4 sm:$0xff]  }
  0x6f   :  { %v2769_v43 = vld [vmem:[%s3719_s0 + $0xd4] ss:$8 sps:$4 sm:$0xff]   ;;  %v2771_v44 = vld [vmem:[%s3719_s0 + $0xd0] ss:$8 sps:$4 sm:$0xff]   ;;  %v2772_v45 = vld [vmem:[%s3719_s0 + $0xe4] ss:$8 sps:$4 sm:$0xff]  }
  0x70   :  { %v2774_v46 = vld [vmem:[%s3719_s0 + $0xe0] ss:$8 sps:$4 sm:$0xff]   ;;  %v2775_v47 = vld [vmem:[%s3719_s0 + $0xf4] ss:$8 sps:$4 sm:$0xff]   ;;  %v2777_v48 = vld [vmem:[%s3719_s0 + $0xf0] ss:$8 sps:$4 sm:$0xff]  }
  0x71   :  { %472 = vmatmul.mubr.bf16.gmra.mxu0 %v2750_v30  ;;  %v2778_v49 = vld [vmem:[%s3719_s0 + $0x104] ss:$8 sps:$4 sm:$0xff]   ;;  %v2780_v50 = vld [vmem:[%s3719_s0 + $0x100] ss:$8 sps:$4 sm:$0xff]   ;;  %v2781_v51 = vld [vmem:[%s3719_s0 + $0x114] ss:$8 sps:$4 sm:$0xff]  }
  0x72   :  { %479 = vmatprep.mubr.bf16.mxu0 %v2751_v31  ;;  %v2783_v52 = vld [vmem:[%s3719_s0 + $0x110] ss:$8 sps:$4 sm:$0xff]   ;;  %v3174_v53 = vld [vmem:[%s3721_s2] ss:$0 sm:$0xff]  ;;  %vm604_vm0 = vcmask 261120   ;;  %vm646_vm1 = vcmask 254976  }
  0x73   :  { %s2932_s0 = smov 32   ;;  %s2933_s2 = smov 64   ;;  %vm663_vm2 = vcmask 523520   ;;  %vm683_vm3 = vcmask 785920   ;;  %vm666_vm4 = vcmask 517376   ;;  %vm703_vm5 = vcmask 1048320  }
  0x74   :  { %s2934_s24 = smov 96   ;;  %vm686_vm6 = vcmask 779776   ;;  %vm706_vm7 = vcmask 1042176   ;;  %vm1270_vm8 = vcmask 523264   ;;  %vm1273_vm9 = vcmask 517120  }
  0x75   :  { %vm1289_vm10 = vcmask 1041920   ;;  %vm2937_vm11 = vmmov 0  }
  0x79   :  { %480 = vmatmul.mubr.bf16.gmra.mxu0 %v2753_v32 }
  0x7a   :  { %487 = vmatprep.mubr.bf16.mxu0 %v2754_v33 }
  0x81   :  { %488 = vmatmul.mubr.bf16.gmra.mxu0 %v2756_v34 }
  0x82   :  { %495 = vmatprep.mubr.bf16.mxu0 %v2757_v35 }
  0x89   :  { %496 = vmatmul.mubr.bf16.gmra.mxu0 %v2759_v36 }
  0x8a   :  { %503 = vmatprep.mubr.bf16.mxu0 %v2760_v37 }
  0x91   :  { %504 = vmatmul.mubr.bf16.gmra.mxu0 %v2762_v38 }
  0x92   :  { %511 = vmatprep.mubr.bf16.mxu0 %v2763_v39 }
  0x99   :  { %512 = vmatmul.mubr.bf16.gmra.mxu0 %v2765_v40 }
  0x9a   :  { %519 = vmatprep.mubr.bf16.mxu0 %v2766_v41 }
  0xa1   :  { %520 = vmatmul.mubr.bf16.gmra.mxu0 %v2768_v42  ;;  %v2784_v42 = vld [vmem:[%s3722_s3 + $0x78] sm:$0xff]  }
  0xa2   :  { %527 = vmatprep.mubr.bf16.mxu0 %v2769_v43  ;;  %2545 = vmatprep.subr.bf16.mxu1 %v2784_v42 }
  0xa9   :  { %528 = vmatmul.mubr.bf16.gmra.mxu0 %v2771_v44 }
  0xaa   :  { %535 = vmatprep.mubr.bf16.mxu0 %v2772_v45 }
  0xb1   :  { %536 = vmatmul.mubr.bf16.gmra.mxu0 %v2774_v46 }
  0xb2   :  { %543 = vmatprep.mubr.bf16.mxu0 %v2775_v47 }
  0xb9   :  { %544 = vmatmul.mubr.bf16.gmra.mxu0 %v2777_v48 }
  0xba   :  { %551 = vmatprep.mubr.bf16.mxu0 %v2778_v49  ;;  %v2785_v49 = vld [vmem:[%s3722_s3 + $0x38] sm:$0xff]  }
  0xbb   :  { %2546 = vmatpush3.bf16.msra.mxu1 %v2785_v49 }
  0xc1   :  { %552 = vmatmul.mubr.bf16.gmra.mxu0 %v2780_v50 }
  0xc2   :  { %559 = vmatprep.mubr.bf16.mxu0 %v2781_v51 }
  0xc9   :  { %560 = vmatmul.mubr.bf16.gmra.mxu0 %v2783_v52 }
 0x101   :  { %v425_v54 = vpop.f32.mrf.mxu0 }
 0x102   :  { %v426_v55 = vadd.f32 %v3174_v53, %v425_v54  ;;  %v2786_v54 = vld [vmem:[%s3722_s3 + $0x70] sm:$0xff]  }
 0x103   :  { %v427_v56 = vpop.f32.mrf.mxu0  ;;  %2547 = vmatprep.subr.bf16.mxu1 %v2786_v54 }
 0x104   :  { %v568_v57 = vmax.f32 %v426_v55, 0.0 }
 0x105   :  { %v428_v58 = vpop.f32.mrf.mxu0 }
 0x106   :  { %605 = vst.msk [vmem:[#allocation2] sm:$0xff] %vm604_vm0, %v568_v57  ;;  %v429_v59 = vadd.f32 %v3174_v53, %v428_v58  ;;  %v2787_v57 = vld [vmem:[%s3722_s3 + $0x30] sm:$0xff]  }
 0x107   :  { %v430_v60 = vpop.f32.mrf.mxu0  ;;  %2548 = vmatpush3.bf16.msra.mxu1 %v2787_v57 }
 0x108   :  { %v569_v61 = vmax.f32 %v429_v59, 0.0 }
 0x109   :  { %v433_v62 = vpop.f32.mrf.mxu0 }
 0x10a   :  { %606 = vst.msk [vmem:[#allocation2 + $0x8] sm:$0xff] %vm604_vm0, %v569_v61  ;;  %v434_v63 = vadd.f32 %v3174_v53, %v433_v62  ;;  %v2788_v61 = vld [vmem:[%s3722_s3 + $0x68] sm:$0xff]  }
 0x10b   :  { %v435_v0 = vpop.f32.mrf.mxu0  ;;  %2549 = vmatprep.subr.bf16.mxu1 %v2788_v61 }
 0x10c   :  { %v570_v2 = vmax.f32 %v434_v63, 0.0  ;;  %v2789_v0 = vld [vmem:[%s3722_s3 + $0x28] sm:$0xff]  }
 0x10d   :  { %v436_v3 = vpop.f32.mrf.mxu0  ;;  %v641_v4 = vld [vmem:[#allocation2] sm:$0xff]  ;;  %2550 = vmatpush3.bf16.msra.mxu1 %v2789_v0 }
 0x10e   :  { %607 = vst.msk [vmem:[#allocation2 + $0x10] sm:$0xff] %vm604_vm0, %v570_v2  ;;  %v437_v5 = vadd.f32 %v3174_v53, %v436_v3  ;;  %644 = vst.msk [vmem:[#allocation3] sm:$0xff] %vm604_vm0, %v641_v4 }
 0x10f   :  { %v438_v6 = vpop.f32.mrf.mxu0 }
 0x110   :  { %v571_v7 = vmax.f32 %v437_v5, 0.0  ;;  %v2790_v5 = vld [vmem:[%s3722_s3 + $0x60] sm:$0xff]  }
 0x111   :  { %v441_v8 = vpop.f32.mrf.mxu0  ;;  %v642_v9 = vld [vmem:[#allocation2 + $0x8] sm:$0xff]  ;;  %2551 = vmatprep.subr.bf16.mxu1 %v2790_v5 }
 0x112   :  { %608 = vst.msk [vmem:[#allocation2 + $0x18] sm:$0xff] %vm604_vm0, %v571_v7  ;;  %v442_v10 = vadd.f32 %v3174_v53, %v441_v8  ;;  %645 = vst.msk [vmem:[#allocation3 + $0x20] sm:$0xff] %vm604_vm0, %v642_v9  ;;  %v2791_v8 = vld [vmem:[%s3722_s3 + $0x20] sm:$0xff]  }
 0x113   :  { %v443_v11 = vpop.f32.mrf.mxu0  ;;  %2552 = vmatpush3.bf16.msra.mxu1 %v2791_v8 }
 0x114   :  { %v572_v12 = vmax.f32 %v442_v10, 0.0 }
 0x115   :  { %v444_v13 = vpop.f32.mrf.mxu0  ;;  %v643_v14 = vld [vmem:[#allocation2 + $0x10] sm:$0x3] }
 0x116   :  { %609 = vst.msk [vmem:[#allocation2 + $0x20] sm:$0xff] %vm604_vm0, %v572_v12  ;;  %v445_v15 = vadd.f32 %v3174_v53, %v444_v13  ;;  %v2792_v12 = vld [vmem:[%s3722_s3 + $0x58] sm:$0xff]  }
 0x117   :  { %647 = vst.msk [vmem:[#allocation3 + $0x40] sm:$0x3] %vm646_vm1, %v643_v14  ;;  %v446_v16 = vpop.f32.mrf.mxu0  ;;  %2553 = vmatprep.subr.bf16.mxu1 %v2792_v12 }
 0x118   :  { %v573_v17 = vmax.f32 %v445_v15, 0.0  ;;  %v2793_v15 = vld [vmem:[%s3722_s3 + $0x18] sm:$0xff]  }
 0x119   :  { %v449_v18 = vpop.f32.mrf.mxu0  ;;  %v648_v19 = vld [vmem:[#allocation2 + $0x12] sm:$0xff]  ;;  %2554 = vmatpush3.bf16.msra.mxu1 %v2793_v15 }
 0x11a   :  { %610 = vst.msk [vmem:[#allocation2 + $0x28] sm:$0xff] %vm604_vm0, %v573_v17  ;;  %v450_v20 = vadd.f32 %v3174_v53, %v449_v18  ;;  %654 = vrot.lane.b32.xlu1 %v648_v19, %s2932_s0  ;;  %v2794_v19 = vld [vmem:[%s3722_s3 + $0x50] sm:$0xff]  }
 0x11b   :  { %v451_v21 = vpop.f32.mrf.mxu0  ;;  %2555 = vmatprep.subr.bf16.mxu1 %v2794_v19 }
 0x11c   :  { %v574_v22 = vmax.f32 %v450_v20, 0.0 }
 0x11d   :  { %v452_v23 = vpop.f32.mrf.mxu0  ;;  %v649_v24 = vld [vmem:[#allocation2 + $0x1a] sm:$0xff]  ;;  %v650_v30 = vld [vmem:[#allocation2 + $0x22] sm:$0x3] }
 0x11e   :  { %611 = vst.msk [vmem:[#allocation2 + $0x30] sm:$0xff] %vm604_vm0, %v574_v22  ;;  %v453_v25 = vadd.f32 %v3174_v53, %v452_v23  ;;  %656 = vrot.lane.b32.xlu1 %v649_v24, %s2932_s0  ;;  %v2795_v22 = vld [vmem:[%s3722_s3 + $0x10] sm:$0xff]  }
 0x11f   :  { %v454_v26 = vpop.f32.mrf.mxu0  ;;  %2556 = vmatpush3.bf16.msra.mxu1 %v2795_v22 }
 0x120   :  { %v575_v27 = vmax.f32 %v453_v25, 0.0  ;;  %v2796_v26 = vld [vmem:[%s3722_s3 + $0x48] sm:$0xff]  }
 0x121   :  { %v457_v28 = vpop.f32.mrf.mxu0  ;;  %v668_v29 = vld [vmem:[#allocation2 + $0x24] sm:$0xff]  ;;  %2557 = vmatprep.subr.bf16.mxu1 %v2796_v26 }
 0x122   :  { %612 = vst.msk [vmem:[#allocation2 + $0x38] sm:$0xff] %vm604_vm0, %v575_v27  ;;  %v458_v31 = vadd.f32 %v3174_v53, %v457_v28  ;;  %674 = vrot.lane.b32.xlu0 %v668_v29, %s2933_s2  ;;  %658 = vrot.lane.b32.xlu1 %v650_v30, %s2932_s0  ;;  %v2797_v29 = vld [vmem:[%s3722_s3 + $0x8] sm:$0xff]  }
 0x123   :  { %v459_v32 = vpop.f32.mrf.mxu0  ;;  %2558 = vmatpush3.bf16.msra.mxu1 %v2797_v29 }
 0x124   :  { %v576_v33 = vmax.f32 %v458_v31, 0.0 }
 0x125   :  { %v460_v34 = vpop.f32.mrf.mxu0  ;;  %v669_v35 = vld [vmem:[#allocation2 + $0x2c] sm:$0xff] }
 0x126   :  { %613 = vst.msk [vmem:[#allocation2 + $0x40] sm:$0xff] %vm604_vm0, %v576_v33  ;;  %v461_v36 = vadd.f32 %v3174_v53, %v460_v34  ;;  %676 = vrot.lane.b32.xlu1 %v669_v35, %s2933_s2  ;;  %v2798_v34 = vld [vmem:[%s3722_s3 + $0x40] sm:$0xff]  }
 0x127   :  { %v462_v37 = vpop.f32.mrf.mxu0  ;;  %2559 = vmatprep.subr.bf16.mxu1 %v2798_v34 }
 0x128   :  { %v577_v38 = vmax.f32 %v461_v36, 0.0  ;;  %v2799_v37 = vld [vmem:[%s3722_s3] sm:$0xff]  }
 0x129   :  { %v465_v39 = vpop.f32.mrf.mxu0  ;;  %v688_v40 = vld [vmem:[#allocation2 + $0x36] sm:$0xff]  ;;  %2560 = vmatpush3.bf16.msra.mxu1 %v2799_v37 }
 0x12a   :  { %614 = vst.msk [vmem:[#allocation2 + $0x48] sm:$0xff] %vm604_vm0, %v577_v38  ;;  %v466_v41 = vadd.f32 %v3174_v53, %v465_v39  ;;  %694 = vrot.lane.b32.xlu0 %v688_v40, %s2934_s24 }
 0x12b   :  { %v467_v43 = vpop.f32.mrf.mxu0 }
 0x12c   :  { %v578_v44 = vmax.f32 %v466_v41, 0.0 }
 0x12d   :  { %v468_v45 = vpop.f32.mrf.mxu0  ;;  %v689_v46 = vld [vmem:[#allocation2 + $0x3e] sm:$0xff] }
 0x12e   :  { %615 = vst.msk [vmem:[#allocation2 + $0x50] sm:$0xff] %vm604_vm0, %v578_v44  ;;  %v469_v47 = vadd.f32 %v3174_v53, %v468_v45  ;;  %696 = vrot.lane.b32.xlu1 %v689_v46, %s2934_s24 }
 0x12f   :  { %v470_v48 = vpop.f32.mrf.mxu0 }
 0x130   :  { %v579_v50 = vmax.f32 %v469_v47, 0.0 }
 0x131   :  { %v473_v51 = vpop.f32.mrf.mxu0  ;;  %v708_v52 = vld [vmem:[#allocation2 + $0x48] sm:$0xff] }
 0x132   :  { %616 = vst.msk [vmem:[#allocation2 + $0x58] sm:$0xff] %vm604_vm0, %v579_v50  ;;  %v474_v55 = vadd.f32 %v3174_v53, %v473_v51  ;;  %711 = vst.msk [vmem:[#allocation3 + $0x8] sm:$0xff] %vm604_vm0, %v708_v52  ;;  %v670_v52 = vld [vmem:[#allocation2 + $0x34] sm:$0x3] }
 0x133   :  { %v475_v56 = vpop.f32.mrf.mxu0 }
 0x134   :  { %v580_v58 = vmax.f32 %v474_v55, 0.0 }
 0x135   :  { %v476_v59 = vpop.f32.mrf.mxu0  ;;  %v709_v60 = vld [vmem:[#allocation2 + $0x50] sm:$0xff] }
 0x136   :  { %617 = vst.msk [vmem:[#allocation2 + $0x60] sm:$0xff] %vm604_vm0, %v580_v58  ;;  %v477_v62 = vadd.f32 %v3174_v53, %v476_v59  ;;  %712 = vst.msk [vmem:[#allocation3 + $0x28] sm:$0xff] %vm604_vm0, %v709_v60  ;;  %v690_v59 = vld [vmem:[#allocation2 + $0x46] sm:$0x3] }
 0x137   :  { %v478_v63 = vpop.f32.mrf.mxu0 }
 0x138   :  { %v581_v2 = vmax.f32 %v477_v62, 0.0 }
 0x139   :  { %v481_v3 = vpop.f32.mrf.mxu0  ;;  %v710_v4 = vld [vmem:[#allocation2 + $0x58] sm:$0x3] }
 0x13a   :  { %618 = vst.msk [vmem:[#allocation2 + $0x68] sm:$0xff] %vm604_vm0, %v581_v2  ;;  %v482_v6 = vadd.f32 %v3174_v53, %v481_v3 }
 0x13b   :  { %713 = vst.msk [vmem:[#allocation3 + $0x48] sm:$0x3] %vm646_vm1, %v710_v4  ;;  %v483_v7 = vpop.f32.mrf.mxu0 }
 0x13c   :  { %v582_v9 = vmax.f32 %v482_v6, 0.0 }
 0x13d   :  { %v484_v10 = vpop.f32.mrf.mxu0  ;;  %v714_v11 = vld [vmem:[#allocation2 + $0x5a] sm:$0xff] }
 0x13e   :  { %619 = vst.msk [vmem:[#allocation2 + $0x70] sm:$0xff] %vm604_vm0, %v582_v9  ;;  %v485_v13 = vadd.f32 %v3174_v53, %v484_v10  ;;  %720 = vrot.lane.b32.xlu0 %v714_v11, %s2932_s0 }
 0x13f   :  { %v486_v14 = vpop.f32.mrf.mxu0 }
 0x140   :  { %v583_v16 = vmax.f32 %v485_v13, 0.0 }
 0x141   :  { %v489_v17 = vpop.f32.mrf.mxu0  ;;  %v715_v18 = vld [vmem:[#allocation2 + $0x62] sm:$0xff]  ;;  %v716_v25 = vld [vmem:[#allocation2 + $0x6a] sm:$0x3] }
 0x142   :  { %620 = vst.msk [vmem:[#allocation2 + $0x78] sm:$0xff] %vm604_vm0, %v583_v16  ;;  %v490_v20 = vadd.f32 %v3174_v53, %v489_v17  ;;  %722 = vrot.lane.b32.xlu0 %v715_v18, %s2932_s0 }
 0x143   :  { %v491_v21 = vpop.f32.mrf.mxu0 }
 0x144   :  { %v584_v23 = vmax.f32 %v490_v20, 0.0 }
 0x145   :  { %v492_v24 = vpop.f32.mrf.mxu0  ;;  %v732_v32 = vld [vmem:[#allocation2 + $0x6c] sm:$0xff] }
 0x146   :  { %621 = vst.msk [vmem:[#allocation2 + $0x80] sm:$0xff] %vm604_vm0, %v584_v23  ;;  %v493_v27 = vadd.f32 %v3174_v53, %v492_v24  ;;  %724 = vrot.lane.b32.xlu0 %v716_v25, %s2932_s0 }
 0x147   :  { %v494_v28 = vpop.f32.mrf.mxu0 }
 0x148   :  { %v585_v30 = vmax.f32 %v493_v27, 0.0 }
 0x149   :  { %v497_v31 = vpop.f32.mrf.mxu0  ;;  %v733_v33 = vld [vmem:[#allocation2 + $0x74] sm:$0xff]  ;;  %v734_v45 = vld [vmem:[#allocation2 + $0x7c] sm:$0x3] }
 0x14a   :  { %622 = vst.msk [vmem:[#allocation2 + $0x88] sm:$0xff] %vm604_vm0, %v585_v30  ;;  %v498_v35 = vadd.f32 %v3174_v53, %v497_v31  ;;  %738 = vrot.lane.b32.xlu0 %v732_v32, %s2933_s2  ;;  %740 = vrot.lane.b32.xlu1 %v733_v33, %s2933_s2 }
 0x14b   :  { %v499_v36 = vpop.f32.mrf.mxu0 }
 0x14c   :  { %v586_v38 = vmax.f32 %v498_v35, 0.0  ;;  %v2800_v36 = vld [vmem:[%s3722_s3 + $0xf8] sm:$0xff]  }
 0x14d   :  { %v500_v39 = vpop.f32.mrf.mxu0  ;;  %v750_v40 = vld [vmem:[#allocation2 + $0x7e] sm:$0xff]  ;;  %2573 = vmatprep.subr.bf16.mxu1 %v2800_v36 }
 0x14e   :  { %623 = vst.msk [vmem:[#allocation2 + $0x90] sm:$0xff] %vm604_vm0, %v586_v38  ;;  %v501_v41 = vadd.f32 %v3174_v53, %v500_v39  ;;  %756 = vrot.lane.b32.xlu0 %v750_v40, %s2934_s24  ;;  %v2801_v36 = vld [vmem:[%s3722_s3 + $0xb8] sm:$0xff]  }
 0x14f   :  { %v502_v42 = vpop.f32.mrf.mxu0 }
 0x150   :  { %v587_v43 = vmax.f32 %v501_v41, 0.0 }
 0x151   :  { %v505_v44 = vpop.f32.mrf.mxu0  ;;  %v751_v46 = vld [vmem:[#allocation2 + $0x86] sm:$0xff]  ;;  %v752_v51 = vld [vmem:[#allocation2 + $0x8e] sm:$0x3] }
 0x152   :  { %624 = vst.msk [vmem:[#allocation2 + $0x98] sm:$0xff] %vm604_vm0, %v587_v43  ;;  %v506_v47 = vadd.f32 %v3174_v53, %v505_v44  ;;  %742 = vrot.lane.b32.xlu0 %v734_v45, %s2933_s2  ;;  %758 = vrot.lane.b32.xlu1 %v751_v46, %s2934_s24 }
 0x153   :  { %v507_v48 = vpop.f32.mrf.mxu0 }
 0x154   :  { %v588_v49 = vmax.f32 %v506_v47, 0.0 }
 0x155   :  { %v508_v50 = vpop.f32.mrf.mxu0  ;;  %v768_v54 = vld [vmem:[#allocation2 + $0x90] sm:$0xff] }
 0x156   :  { %625 = vst.msk [vmem:[#allocation2 + $0xa0] sm:$0xff] %vm604_vm0, %v588_v49  ;;  %v509_v55 = vadd.f32 %v3174_v53, %v508_v50  ;;  %760 = vrot.lane.b32.xlu0 %v752_v51, %s2934_s24  ;;  %678 = vrot.lane.b32.xlu1 %v670_v52, %s2933_s2  ;;  %771 = vst.msk [vmem:[#allocation3 + $0x10] sm:$0xff] %vm604_vm0, %v768_v54 }
 0x157   :  { %v510_v56 = vpop.f32.mrf.mxu0 }
 0x158   :  { %v589_v57 = vmax.f32 %v509_v55, 0.0 }
 0x159   :  { %v513_v58 = vpop.f32.mrf.mxu0  ;;  %v769_v60 = vld [vmem:[#allocation2 + $0x98] sm:$0xff] }
 0x15a   :  { %626 = vst.msk [vmem:[#allocation2 + $0xa8] sm:$0xff] %vm604_vm0, %v589_v57  ;;  %v514_v61 = vadd.f32 %v3174_v53, %v513_v58  ;;  %698 = vrot.lane.b32.xlu1 %v690_v59, %s2934_s24  ;;  %772 = vst.msk [vmem:[#allocation3 + $0x30] sm:$0xff] %vm604_vm0, %v769_v60 }
 0x15b   :  { %v515_v62 = vpop.f32.mrf.mxu0 }
 0x15c   :  { %v590_v63 = vmax.f32 %v514_v61, 0.0 }
 0x15d   :  { %v516_v0 = vpop.f32.mrf.mxu0  ;;  %v770_v2 = vld [vmem:[#allocation2 + $0xa0] sm:$0x3] }
 0x15e   :  { %627 = vst.msk [vmem:[#allocation2 + $0xb0] sm:$0xff] %vm604_vm0, %v590_v63  ;;  %v517_v3 = vadd.f32 %v3174_v53, %v516_v0 }
 0x15f   :  { %773 = vst.msk [vmem:[#allocation3 + $0x50] sm:$0x3] %vm646_vm1, %v770_v2  ;;  %v518_v4 = vpop.f32.mrf.mxu0 }
 0x160   :  { %v591_v5 = vmax.f32 %v517_v3, 0.0 }
 0x161   :  { %v521_v6 = vpop.f32.mrf.mxu0  ;;  %v774_v7 = vld [vmem:[#allocation2 + $0xa2] sm:$0xff] }
 0x162   :  { %628 = vst.msk [vmem:[#allocation2 + $0xb8] sm:$0xff] %vm604_vm0, %v591_v5  ;;  %v522_v8 = vadd.f32 %v3174_v53, %v521_v6  ;;  %780 = vrot.lane.b32.xlu0 %v774_v7, %s2932_s0 }
 0x163   :  { %v523_v9 = vpop.f32.mrf.mxu0 }
 0x164   :  { %v592_v10 = vmax.f32 %v522_v8, 0.0 }
 0x165   :  { %v524_v11 = vpop.f32.mrf.mxu0  ;;  %v775_v12 = vld [vmem:[#allocation2 + $0xaa] sm:$0xff] }
 0x166   :  { %629 = vst.msk [vmem:[#allocation2 + $0xc0] sm:$0xff] %vm604_vm0, %v592_v10  ;;  %v525_v13 = vadd.f32 %v3174_v53, %v524_v11  ;;  %782 = vrot.lane.b32.xlu1 %v775_v12, %s2932_s0 }
 0x167   :  { %v526_v14 = vpop.f32.mrf.mxu0 }
 0x168   :  { %v593_v15 = vmax.f32 %v525_v13, 0.0 }
 0x169   :  { %v529_v16 = vpop.f32.mrf.mxu0  ;;  %v792_v17 = vld [vmem:[#allocation2 + $0xb4] sm:$0xff] }
 0x16a   :  { %630 = vst.msk [vmem:[#allocation2 + $0xc8] sm:$0xff] %vm604_vm0, %v593_v15  ;;  %v530_v18 = vadd.f32 %v3174_v53, %v529_v16  ;;  %798 = vrot.lane.b32.xlu0 %v792_v17, %s2933_s2  ;;  %v776_v16 = vld [vmem:[#allocation2 + $0xb2] sm:$0x3] }
 0x16b   :  { %v531_v19 = vpop.f32.mrf.mxu0 }
 0x16c   :  { %v594_v20 = vmax.f32 %v530_v18, 0.0 }
 0x16d   :  { %v532_v21 = vpop.f32.mrf.mxu0  ;;  %v793_v22 = vld [vmem:[#allocation2 + $0xbc] sm:$0xff]  ;;  %v794_v18 = vld [vmem:[#allocation2 + $0xc4] sm:$0x3] }
 0x16e   :  { %631 = vst.msk [vmem:[#allocation2 + $0xd0] sm:$0xff] %vm604_vm0, %v594_v20  ;;  %v533_v23 = vadd.f32 %v3174_v53, %v532_v21  ;;  %800 = vrot.lane.b32.xlu1 %v793_v22, %s2933_s2 }
 0x16f   :  { %v534_v24 = vpop.f32.mrf.mxu0 }
 0x170   :  { %v595_v25 = vmax.f32 %v533_v23, 0.0 }
 0x171   :  { %v537_v26 = vpop.f32.mrf.mxu0  ;;  %v810_v9 = vld [vmem:[#allocation2 + $0xc6] sm:$0xff] }
 0x172   :  { %632 = vst.msk [vmem:[#allocation2 + $0xd8] sm:$0xff] %vm604_vm0, %v595_v25  ;;  %v538_v27 = vadd.f32 %v3174_v53, %v537_v26 }
 0x173   :  { %v539_v28 = vpop.f32.mrf.mxu0 }
 0x174   :  { %v596_v29 = vmax.f32 %v538_v27, 0.0 }
 0x175   :  { %v540_v30 = vpop.f32.mrf.mxu0  ;;  %v811_v13 = vld [vmem:[#allocation2 + $0xce] sm:$0xff]  ;;  %v812_v19 = vld [vmem:[#allocation2 + $0xd6] sm:$0x3] }
 0x176   :  { %633 = vst.msk [vmem:[#allocation2 + $0xe0] sm:$0xff] %vm604_vm0, %v596_v29  ;;  %v541_v31 = vadd.f32 %v3174_v53, %v540_v30 }
 0x177   :  { %v542_v32 = vpop.f32.mrf.mxu0 }
 0x178   :  { %v597_v33 = vmax.f32 %v541_v31, 0.0 }
 0x179   :  { %v545_v34 = vpop.f32.mrf.mxu0  ;;  %v828_v35 = vld [vmem:[#allocation2 + $0xd8] sm:$0xff] }
 0x17a   :  { %634 = vst.msk [vmem:[#allocation2 + $0xe8] sm:$0xff] %vm604_vm0, %v597_v33  ;;  %v546_v37 = vadd.f32 %v3174_v53, %v545_v34  ;;  %831 = vst.msk [vmem:[#allocation3 + $0x18] sm:$0xff] %vm604_vm0, %v828_v35 }
 0x17b   :  { %v547_v38 = vpop.f32.mrf.mxu0 }
 0x17c   :  { %v598_v39 = vmax.f32 %v546_v37, 0.0  ;;  %v2802_v38 = vld [vmem:[%s3722_s3 + $0xf0] sm:$0xff]  }
 0x17d   :  { %v548_v40 = vpop.f32.mrf.mxu0  ;;  %v829_v41 = vld [vmem:[#allocation2 + $0xe0] sm:$0xff] }
 0x17e   :  { %635 = vst.msk [vmem:[#allocation2 + $0xf0] sm:$0xff] %vm604_vm0, %v598_v39  ;;  %v549_v42 = vadd.f32 %v3174_v53, %v548_v40  ;;  %832 = vst.msk [vmem:[#allocation3 + $0x38] sm:$0xff] %vm604_vm0, %v829_v41  ;;  %v2803_v41 = vld [vmem:[%s3722_s3 + $0xb0] sm:$0xff]  }
 0x17f   :  { %v550_v43 = vpop.f32.mrf.mxu0 }
 0x180   :  { %v599_v44 = vmax.f32 %v549_v42, 0.0  ;;  %v2804_v42 = vld [vmem:[%s3722_s3 + $0xe8] sm:$0xff]  }
 0x181   :  { %v553_v45 = vpop.f32.mrf.mxu0  ;;  %v830_v46 = vld [vmem:[#allocation2 + $0xe8] sm:$0x3] }
 0x182   :  { %636 = vst.msk [vmem:[#allocation2 + $0xf8] sm:$0xff] %vm604_vm0, %v599_v44  ;;  %v554_v47 = vadd.f32 %v3174_v53, %v553_v45 }
 0x183   :  { %833 = vst.msk [vmem:[#allocation3 + $0x58] sm:$0x3] %vm646_vm1, %v830_v46  ;;  %v555_v48 = vpop.f32.mrf.mxu0  ;;  %v2805_v46 = vld [vmem:[%s3722_s3 + $0xa8] sm:$0xff]  }
 0x184   :  { %v600_v49 = vmax.f32 %v554_v47, 0.0  ;;  %v2806_v47 = vld [vmem:[%s3722_s3 + $0xe0] sm:$0xff]  }
 0x185   :  { %v556_v50 = vpop.f32.mrf.mxu0  ;;  %v834_v51 = vld [vmem:[#allocation2 + $0xea] sm:$0xff] }
 0x186   :  { %637 = vst.msk [vmem:[#allocation2 + $0x100] sm:$0xff] %vm604_vm0, %v600_v49  ;;  %v557_v52 = vadd.f32 %v3174_v53, %v556_v50  ;;  %840 = vrot.lane.b32.xlu0 %v834_v51, %s2932_s0  ;;  %v2807_v49 = vld [vmem:[%s3722_s3 + $0xa0] sm:$0xff]   ;;  %v2808_v50 = vld [vmem:[%s3722_s3 + $0xd8] sm:$0xff]  }
 0x187   :  { %v558_v54 = vpop.f32.mrf.mxu0 }
 0x188   :  { %v601_v55 = vmax.f32 %v557_v52, 0.0  ;;  %v2809_v52 = vld [vmem:[%s3722_s3 + $0x98] sm:$0xff]   ;;  %v2810_v54 = vld [vmem:[%s3722_s3 + $0xd0] sm:$0xff]  }
 0x189   :  { %v561_v56 = vpop.f32.mrf.mxu0  ;;  %v835_v57 = vld [vmem:[#allocation2 + $0xf2] sm:$0xff]  ;;  %v836_v12 = vld [vmem:[#allocation2 + $0xfa] sm:$0x3] }
 0x18a   :  { %638 = vst.msk [vmem:[#allocation2 + $0x108] sm:$0xff] %vm604_vm0, %v601_v55  ;;  %v562_v58 = vadd.f32 %v3174_v53, %v561_v56  ;;  %842 = vrot.lane.b32.xlu1 %v835_v57, %s2932_s0  ;;  %v2811_v56 = vld [vmem:[%s3722_s3 + $0x90] sm:$0xff]   ;;  %v2812_v57 = vld [vmem:[%s3722_s3 + $0xc8] sm:$0xff]  }
 0x18b   :  { %v563_v59 = vpop.f32.mrf.mxu0 }
 0x18c   :  { %v602_v60 = vmax.f32 %v562_v58, 0.0  ;;  %v655_v61 = vpop.permute.xlu1 %654  ;;  %v2813_v58 = vld [vmem:[%s3722_s3 + $0x88] sm:$0xff]   ;;  %v2814_v59 = vld [vmem:[%s3722_s3 + $0xc0] sm:$0xff]  }
 0x18d   :  { %664 = vst.msk [vmem:[#allocation3] sm:$0xff] %vm663_vm2, %v655_v61  ;;  %v564_v62 = vpop.f32.mrf.mxu0  ;;  %v852_v63 = vld [vmem:[#allocation2 + $0xfc] sm:$0xff] }
 0x18e   :  { %639 = vst.msk [vmem:[#allocation2 + $0x110] sm:$0xff] %vm604_vm0, %v602_v60  ;;  %v565_v0 = vadd.f32 %v3174_v53, %v564_v62  ;;  %858 = vrot.lane.b32.xlu0 %v852_v63, %s2933_s2  ;;  %v2815_v60 = vld [vmem:[%s3722_s3 + $0x80] sm:$0xff]  }
 0x18f   :  { %v566_v2 = vpop.f32.mrf.mxu0 }
 0x190   :  { %v603_v3 = vmax.f32 %v565_v0, 0.0  ;;  %v657_v4 = vpop.permute.xlu1 %656 }
 0x191   :  { %665 = vst.msk [vmem:[#allocation3 + $0x20] sm:$0xff] %vm663_vm2, %v657_v4  ;;  %v853_v5 = vld [vmem:[#allocation2 + $0x104] sm:$0xff]  ;;  %v854_v15 = vld [vmem:[#allocation2 + $0x10c] sm:$0x3] }
 0x192   :  { %640 = vst.msk [vmem:[#allocation2 + $0x118] sm:$0xff] %vm604_vm0, %v603_v3  ;;  %860 = vrot.lane.b32.xlu1 %v853_v5, %s2933_s2 }
 0x194   :  { %v675_v6 = vpop.permute.xlu0 %674  ;;  %v659_v7 = vpop.permute.xlu1 %658 }
 0x195   :  { %684 = vst.msk [vmem:[#allocation3] sm:$0xff] %vm683_vm3, %v675_v6  ;;  %v870_v53 = vld [vmem:[#allocation2 + $0x10e] sm:$0xff] }
 0x196   :  { %667 = vst.msk [vmem:[#allocation3 + $0x40] sm:$0x3] %vm666_vm4, %v659_v7  ;;  %876 = vrot.lane.b32.xlu0 %v870_v53, %s2934_s24 }
 0x198   :  { %v677_v8 = vpop.permute.xlu1 %676 }
 0x199   :  { %685 = vst.msk [vmem:[#allocation3 + $0x20] sm:$0xff] %vm683_vm3, %v677_v8  ;;  %v871_v10 = vld [vmem:[#allocation2 + $0x116] sm:$0xff]  ;;  %v872_v17 = vld [vmem:[#allocation2 + $0x11e] sm:$0x3] }
 0x19a   :  { %816 = vrot.lane.b32.xlu0 %v810_v9, %s2934_s24  ;;  %878 = vrot.lane.b32.xlu1 %v871_v10, %s2934_s24 }
 0x19c   :  { %v695_v11 = vpop.permute.xlu0 %694 }
 0x19d   :  { %704 = vst.msk [vmem:[#allocation3] sm:$0xff] %vm703_vm5, %v695_v11 }
 0x19e   :  { %844 = vrot.lane.b32.xlu0 %v836_v12, %s2932_s0  ;;  %818 = vrot.lane.b32.xlu1 %v811_v13, %s2934_s24 }
 0x1a0   :  { %v697_v14 = vpop.permute.xlu1 %696 }
 0x1a1   :  { %705 = vst.msk [vmem:[#allocation3 + $0x20] sm:$0xff] %vm703_vm5, %v697_v14 }
 0x1a2   :  { %862 = vrot.lane.b32.xlu0 %v854_v15, %s2933_s2  ;;  %784 = vrot.lane.b32.xlu1 %v776_v16, %s2932_s0 }
 0x1a4   :  { %v888_v35 = vld [vmem:[#allocation3] sm:$0xff] }
 0x1a6   :  { %880 = vrot.lane.b32.xlu0 %v872_v17, %s2934_s24  ;;  %802 = vrot.lane.b32.xlu1 %v794_v18, %s2933_s2 }
 0x1a8   :  { %v892_v30 = vld [vmem:[#allocation3 + $0x20] sm:$0xff] }
 0x1a9   :  { %v900_v37 = vpack.c.bf16 %v892_v30, %v888_v35 }
 0x1aa   :  { %820 = vrot.lane.b32.xlu1 %v812_v19, %s2934_s24 }
 0x1b0   :  { %v721_v20 = vpop.permute.xlu0 %720 }
 0x1b1   :  { %729 = vst.msk [vmem:[#allocation3 + $0x8] sm:$0xff] %vm663_vm2, %v721_v20 }
 0x1b4   :  { %v723_v21 = vpop.permute.xlu0 %722 }
 0x1b5   :  { %730 = vst.msk [vmem:[#allocation3 + $0x28] sm:$0xff] %vm663_vm2, %v723_v21  ;;  %v2816_v21 = vld [vmem:[%s3724_s5 + $0x78] sm:$0xff]  }
 0x1b8   :  { %v725_v22 = vpop.permute.xlu0 %724 }
 0x1b9   :  { %731 = vst.msk [vmem:[#allocation3 + $0x48] sm:$0x3] %vm666_vm4, %v725_v22  ;;  %v2817_v22 = vld [vmem:[%s3724_s5 + $0x38] sm:$0xff]  }
 0x1bc   :  { %v739_v23 = vpop.permute.xlu0 %738  ;;  %v741_v24 = vpop.permute.xlu1 %740 }
 0x1bd   :  { %747 = vst.msk [vmem:[#allocation3 + $0x8] sm:$0xff] %vm683_vm3, %v739_v23  ;;  %748 = vst.msk [vmem:[#allocation3 + $0x28] sm:$0xff] %vm683_vm3, %v741_v24  ;;  %v2818_v23 = vld [vmem:[%s3724_s5 + $0x70] sm:$0xff]  }
 0x1be   :  { %v2819_v24 = vld [vmem:[%s3724_s5 + $0x30] sm:$0xff]  }
 0x1c0   :  { %v757_v25 = vpop.permute.xlu0 %756 }
 0x1c1   :  { %765 = vst.msk [vmem:[#allocation3 + $0x8] sm:$0xff] %vm703_vm5, %v757_v25  ;;  %v2820_v25 = vld [vmem:[%s3724_s5 + $0x68] sm:$0xff]  }
 0x1c4   :  { %v743_v26 = vpop.permute.xlu0 %742  ;;  %v759_v27 = vpop.permute.xlu1 %758 }
 0x1c5   :  { %749 = vst.msk [vmem:[#allocation3 + $0x48] sm:$0x3] %vm686_vm6, %v743_v26  ;;  %v2821_v26 = vld [vmem:[%s3724_s5 + $0x28] sm:$0xff]  }
 0x1c6   :  { %766 = vst.msk [vmem:[#allocation3 + $0x28] sm:$0xff] %vm703_vm5, %v759_v27  ;;  %v2822_v27 = vld [vmem:[%s3724_s5 + $0x60] sm:$0xff]  }
 0x1c8   :  { %v761_v28 = vpop.permute.xlu0 %760  ;;  %v679_v29 = vpop.permute.xlu1 %678  ;;  %v889_v32 = vld [vmem:[#allocation3 + $0x8] sm:$0xff] }
 0x1c9   :  { %767 = vst.msk [vmem:[#allocation3 + $0x48] sm:$0x3] %vm706_vm7, %v761_v28  ;;  %v2823_v28 = vld [vmem:[%s3724_s5 + $0x20] sm:$0xff]  }
 0x1ca   :  { %687 = vst.msk [vmem:[#allocation3 + $0x40] sm:$0x3] %vm686_vm6, %v679_v29 }
 0x1cc   :  { %v699_v31 = vpop.permute.xlu1 %698 }
 0x1cd   :  { %v893_v33 = vld [vmem:[#allocation3 + $0x28] sm:$0xff]  ;;  %707 = vst.msk [vmem:[#allocation3 + $0x40] sm:$0x3] %vm706_vm7, %v699_v31 }
 0x1ce   :  { %v901_v34 = vpack.c.bf16 %v893_v33, %v889_v32 }
 0x1d0   :  { %1203 = vmatprep.mubr.bf16.mxu1 %v901_v34  ;;  %v897_v39 = vld [vmem:[#allocation3 + $0x48] sm:$0x3] }
 0x1d1   :  { %1204 = vmatmul.mubr.bf16.vlgmr.msra.gmra.mxu1 %v900_v37  ;;  %v905_v40 = vpack.c.bf16 %v897_v39, %v897_v39 }
 0x1d2   :  { %2574 = vmatpush3.bf16.msra.mxu1 %v2801_v36 }
 0x1d3   :  { %2575 = vmatprep.subr.bf16.mxu1 %v2802_v38  ;;  %1211 = vmatprep.mubr.bf16.mxu1 %v905_v40  ;;  %v2418_v40 = vld [vmem:[%s3723_s4] ss:$0 sm:$0xff]  ;;  %s2938_s4 = smov [#allocation6]  }
 0x1d4   :  { %v781_v43 = vpop.permute.xlu0 %780  ;;  %v896_v44 = vld [vmem:[#allocation3 + $0x40] sm:$0x3]  ;;  %s2357_s3 = sshll.u32 %s2938_s4, 4  ;;  %s2358_s3 = int_to_ptr.vmem [resolvable:$true] %s2357_s3 }
 0x1d5   :  { %789 = vst.msk [vmem:[#allocation3 + $0x10] sm:$0xff] %vm663_vm2, %v781_v43  ;;  %v904_v45 = vpack.c.bf16 %v896_v44, %v896_v44  ;;  %s2909_s28 = scalar_lea.vmem %s2358_s3, 32  ;;  %p2914_p1 = scmp.lt.s32.totalorder %s2358_s3, %s2358_s3 }
 0x1d6   :  { %2576 = vmatpush3.bf16.msra.mxu1 %v2803_v41  ;;  %p2910_p0 = scmp.ne.s32.totalorder %s2358_s3, %s2909_s28  ;;  %p2915_p2 = scmp.lt.s32.totalorder %s2909_s28, %s2909_s28 }
 0x1d7   :  { %2577 = vmatprep.subr.bf16.mxu1 %v2804_v42 }
 0x1d8   :  { %v783_v48 = vpop.permute.xlu1 %782  ;;  %p2916_p3 = por %p2915_p2, %p2914_p1 }
 0x1d9   :  { %1212 = vmatmul.mubr.bf16.gmra.mxu1 %v904_v45  ;;  %790 = vst.msk [vmem:[#allocation3 + $0x30] sm:$0xff] %vm663_vm2, %v783_v48  ;;  %v2825_v48 = vld [vmem:[%s3724_s5 + $0x18] sm:$0xff]  }
 0x1da   :  { %2578 = vmatpush3.bf16.msra.mxu1 %v2805_v46  ;;  %p2917_p4 = pnand %p2916_p3, %p2910_p0 }
 0x1db   :  { %2579 = vmatprep.subr.bf16.mxu1 %v2806_v47  ;;  %v2824_v47 = vld [vmem:[%s3724_s5 + $0x58] sm:$0xff]  }
 0x1dc   :  { %v799_v51 = vpop.permute.xlu0 %798 }
 0x1dd   :  { %807 = vst.msk [vmem:[#allocation3 + $0x10] sm:$0xff] %vm683_vm3, %v799_v51 }
 0x1de   :  { %2580 = vmatpush3.bf16.msra.mxu1 %v2807_v49 }
 0x1df   :  { %2581 = vmatprep.subr.bf16.mxu1 %v2808_v50 }
 0x1e0   :  { %v801_v55 = vpop.permute.xlu1 %800 }
 0x1e1   :  { %808 = vst.msk [vmem:[#allocation3 + $0x30] sm:$0xff] %vm683_vm3, %v801_v55  ;;  %v2826_v55 = vld [vmem:[%s3724_s5 + $0x50] sm:$0xff]  }
 0x1e2   :  { %2582 = vmatpush3.bf16.msra.mxu1 %v2809_v52 }
 0x1e3   :  { %2583 = vmatprep.subr.bf16.mxu1 %v2810_v54 }
 0x1e6   :  { %2584 = vmatpush3.bf16.msra.mxu1 %v2811_v56  ;;  %v2827_v56 = vld [vmem:[%s3724_s5 + $0x10] sm:$0xff]  }
 0x1e7   :  { %2585 = vmatprep.subr.bf16.mxu1 %v2812_v57  ;;  %v2828_v57 = vld [vmem:[%s3724_s5 + $0x48] sm:$0xff]  }
 0x1ea   :  { %2586 = vmatpush3.bf16.msra.mxu1 %v2813_v58 }
 0x1eb   :  { %2587 = vmatprep.subr.bf16.mxu1 %v2814_v59 }
 0x1ee   :  { %2588 = vmatpush3.bf16.msra.mxu1 %v2815_v60  ;;  %v2829_v60 = vld [vmem:[%s3724_s5 + $0x8] sm:$0xff]  }
 0x1ef   :  { %2601 = vmatprep.subr.bf16.mxu1 %v2816_v21 }
 0x1f8   :  { %v841_v61 = vpop.permute.xlu0 %840 }
 0x1f9   :  { %849 = vst.msk [vmem:[#allocation3 + $0x18] sm:$0xff] %vm663_vm2, %v841_v61  ;;  %v2830_v61 = vld [vmem:[%s3724_s5 + $0x40] sm:$0xff]  }
 0x1fc   :  { %v843_v62 = vpop.permute.xlu1 %842 }
 0x1fd   :  { %850 = vst.msk [vmem:[#allocation3 + $0x38] sm:$0xff] %vm663_vm2, %v843_v62 }
 0x200   :  { %v859_v63 = vpop.permute.xlu0 %858 }
 0x201   :  { %867 = vst.msk [vmem:[#allocation3 + $0x18] sm:$0xff] %vm683_vm3, %v859_v63 }
 0x204   :  { %v861_v0 = vpop.permute.xlu1 %860 }
 0x205   :  { %868 = vst.msk [vmem:[#allocation3 + $0x38] sm:$0xff] %vm683_vm3, %v861_v0 }
 0x208   :  { %v877_v2 = vpop.permute.xlu0 %876 }
 0x209   :  { %885 = vst.msk [vmem:[#allocation3 + $0x18] sm:$0xff] %vm703_vm5, %v877_v2  ;;  %v2831_v2 = vld [vmem:[%s3724_s5] sm:$0xff]  }
 0x20c   :  { %v817_v3 = vpop.permute.xlu0 %816  ;;  %v879_v4 = vpop.permute.xlu1 %878 }
 0x20d   :  { %825 = vst.msk [vmem:[#allocation3 + $0x10] sm:$0xff] %vm703_vm5, %v817_v3  ;;  %886 = vst.msk [vmem:[#allocation3 + $0x38] sm:$0xff] %vm703_vm5, %v879_v4 }
 0x210   :  { %v845_v5 = vpop.permute.xlu0 %844  ;;  %v819_v6 = vpop.permute.xlu1 %818  ;;  %v891_v8 = vld [vmem:[#allocation3 + $0x18] sm:$0xff] }
 0x211   :  { %851 = vst.msk [vmem:[#allocation3 + $0x58] sm:$0x3] %vm666_vm4, %v845_v5 }
 0x212   :  { %826 = vst.msk [vmem:[#allocation3 + $0x30] sm:$0xff] %vm703_vm5, %v819_v6 }
 0x214   :  { %v863_v7 = vpop.permute.xlu0 %862  ;;  %v785_v53 = vpop.permute.xlu1 %784  ;;  %v895_v9 = vld [vmem:[#allocation3 + $0x38] sm:$0xff]  ;;  %v890_v13 = vld [vmem:[#allocation3 + $0x10] sm:$0xff] }
 0x215   :  { %869 = vst.msk [vmem:[#allocation3 + $0x58] sm:$0x3] %vm686_vm6, %v863_v7  ;;  %v903_v10 = vpack.c.bf16 %v895_v9, %v891_v8 }
 0x216   :  { %791 = vst.msk [vmem:[#allocation3 + $0x50] sm:$0x3] %vm666_vm4, %v785_v53 }
 0x217   :  { %1251 = vmatprep.mubr.bf16.mxu1 %v903_v10 }
 0x218   :  { %v881_v11 = vpop.permute.xlu0 %880  ;;  %v803_v12 = vpop.permute.xlu1 %802 }
 0x219   :  { %v894_v14 = vld [vmem:[#allocation3 + $0x30] sm:$0xff]  ;;  %887 = vst.msk [vmem:[#allocation3 + $0x58] sm:$0x3] %vm706_vm7, %v881_v11 }
 0x21a   :  { %809 = vst.msk [vmem:[#allocation3 + $0x50] sm:$0x3] %vm686_vm6, %v803_v12  ;;  %v902_v15 = vpack.c.bf16 %v894_v14, %v890_v13  ;;  %v2832_v14 = vld [vmem:[%s3724_s5 + $0xf8] sm:$0xff]  }
 0x21c   :  { %1252 = vmatmul.mubr.bf16.vlgmr.msra.gmra.mxu1 %v902_v15  ;;  %v821_v16 = vpop.permute.xlu1 %820 }
 0x21d   :  { %827 = vst.msk [vmem:[#allocation3 + $0x50] sm:$0x3] %vm706_vm7, %v821_v16  ;;  %2602 = vmatpush3.bf16.msra.mxu1 %v2817_v22 }
 0x21e   :  { %2603 = vmatprep.subr.bf16.mxu1 %v2818_v23 }
 0x220   :  { %v899_v17 = vld [vmem:[#allocation3 + $0x58] sm:$0x3] }
 0x221   :  { %v907_v18 = vpack.c.bf16 %v899_v17, %v899_v17  ;;  %2604 = vmatpush3.bf16.msra.mxu1 %v2819_v24 }
 0x222   :  { %2605 = vmatprep.subr.bf16.mxu1 %v2820_v25 }
 0x223   :  { %1259 = vmatprep.mubr.bf16.mxu1 %v907_v18  ;;  %v2935_v18 = vmov 1983009808  }
 0x224   :  { %v898_v19 = vld [vmem:[#allocation3 + $0x50] sm:$0x3] }
 0x225   :  { %v906_v20 = vpack.c.bf16 %v898_v19, %v898_v19  ;;  %2606 = vmatpush3.bf16.msra.mxu1 %v2821_v26  ;;  %v1344_v19 = vunpack.c.l.s4 %v2935_v18 }
 0x226   :  { %2607 = vmatprep.subr.bf16.mxu1 %v2822_v27 }
 0x227   :  { %1260 = vmatmul.mubr.bf16.gmra.mxu1 %v906_v20  ;;  %v1346_v20 = vlaneseq  ;;  %v1345_v23 = vunpack.c.0.s8 %v1344_v19 }
 0x229   :  { %2608 = vmatpush3.bf16.msra.mxu1 %v2823_v28  ;;  %v3494_v24 = vshrl.u32 %v1346_v20, 7 }
 0x22a   :  { %2609 = vmatprep.subr.bf16.mxu1 %v2824_v47  ;;  %v2846_v47 = vld [vmem:[%s3724_s5 + $0x88] sm:$0xff]  }
 0x22b   :  { %v1348_v25 = vsub.s32 %v1345_v23, %v3494_v24 }
 0x22d   :  { %2610 = vmatpush3.bf16.msra.mxu1 %v2825_v48  ;;  %v2847_v48 = vld [vmem:[%s3724_s5 + $0xc0] sm:$0xff]  }
 0x22e   :  { %2611 = vmatprep.subr.bf16.mxu1 %v2826_v55  ;;  %v2851_v55 = vld [vmem:[%s3724_s5 + $0x108] sm:$0xff]  }
 0x231   :  { %2612 = vmatpush3.bf16.msra.mxu1 %v2827_v56  ;;  %v2852_v56 = vld [vmem:[%s3724_s5 + $0x100] sm:$0xff]  }
 0x232   :  { %2613 = vmatprep.subr.bf16.mxu1 %v2828_v57 }
 0x235   :  { %2614 = vmatpush3.bf16.msra.mxu1 %v2829_v60  ;;  %v2853_v60 = vld [vmem:[%s3726_s7 + $0x60] ss:$16 sps:$4 sm:$0xff]  }
 0x236   :  { %2615 = vmatprep.subr.bf16.mxu1 %v2830_v61  ;;  %v2858_v61 = vld [vmem:[%s3726_s7 + $0x44] ss:$16 sps:$4 sm:$0xff]  }
 0x239   :  { %2616 = vmatpush3.bf16.msra.mxu1 %v2831_v2  ;;  %v2864_v2 = vld [vmem:[%s3726_s7 + $0x4] ss:$16 sps:$4 sm:$0xff]  }
 0x23a   :  { %2623 = vmatprep.subr.bf16.mxu1 %v2832_v14  ;;  %v2887_v14 = vld [vmem:[%s3728_s9 + $0x50] sm:$0xff]  }
 0x291   :  { %v2561_v29 = vpop.f32.mrf.mxu1 }
 0x293   :  { %v2562_v30 = vpop.f32.mrf.mxu1 }
 0x294   :  { %v2563_v31 = vadd.f32 %v2562_v30, %v2561_v29 }
 0x295   :  { %v2564_v32 = vpop.f32.mrf.mxu1 }
 0x296   :  { %v1206_v43 = vadd.f32 %v2563_v31, %v2418_v40 }
 0x297   :  { %v2565_v33 = vpop.f32.mrf.mxu1 }
 0x298   :  { %v2566_v34 = vadd.f32 %v2565_v33, %v2564_v32  ;;  %v2833_v32 = vld [vmem:[%s3724_s5 + $0xb8] sm:$0xff]  }
 0x299   :  { %v2567_v35 = vpop.f32.mrf.mxu1 }
 0x29a   :  { %v1209_v50 = vadd.f32 %v2566_v34, %v2418_v40 }
 0x29b   :  { %v2568_v36 = vpop.f32.mrf.mxu1 }
 0x29c   :  { %v2569_v37 = vadd.f32 %v2568_v36, %v2567_v35  ;;  %v2835_v35 = vld [vmem:[%s3724_s5 + $0xf0] sm:$0xff]  }
 0x29d   :  { %v2570_v38 = vpop.f32.mrf.mxu1 }
 0x29e   :  { %v1214_v63 = vadd.f32 %v2569_v37, %v2418_v40  ;;  %v2836_v37 = vld [vmem:[%s3724_s5 + $0xb0] sm:$0xff]   ;;  %v2837_v38 = vld [vmem:[%s3724_s5 + $0xe8] sm:$0xff]   ;;  %v2839_v40 = vld [vmem:[%s3724_s5 + $0xe0] sm:$0xff]  }
 0x29f   :  { %v2571_v39 = vpop.f32.mrf.mxu1 }
 0x2a0   :  { %v2838_v39 = vld [vmem:[%s3724_s5 + $0xa8] sm:$0xff]  }
 0x2dc   :  { %v2589_v41 = vpop.f32.mrf.mxu1 }
 0x2de   :  { %v2590_v42 = vpop.f32.mrf.mxu1 }
 0x2df   :  { %v2591_v44 = vadd.f32 %v2590_v42, %v2589_v41  ;;  %v2840_v41 = vld [vmem:[%s3724_s5 + $0xa0] sm:$0xff]   ;;  %v2841_v42 = vld [vmem:[%s3724_s5 + $0xd8] sm:$0xff]  }
 0x2e0   :  { %v2592_v45 = vpop.f32.mrf.mxu1 }
 0x2e1   :  { %v1254_v46 = vadd.f32 %v2591_v44, %v1206_v43  ;;  %v2842_v43 = vld [vmem:[%s3724_s5 + $0x98] sm:$0xff]   ;;  %v2843_v44 = vld [vmem:[%s3724_s5 + $0xd0] sm:$0xff]  }
 0x2e2   :  { %v2593_v49 = vpop.f32.mrf.mxu1 }
 0x2e3   :  { %v1267_v51 = vmax.f32 %v1254_v46, 0.0  ;;  %v2594_v52 = vadd.f32 %v2593_v49, %v2592_v45  ;;  %v2844_v45 = vld [vmem:[%s3724_s5 + $0x90] sm:$0xff]   ;;  %v2845_v46 = vld [vmem:[%s3724_s5 + $0xc8] sm:$0xff]   ;;  %v2848_v49 = vld [vmem:[%s3724_s5 + $0x80] sm:$0xff]  }
 0x2e5   :  { %1271 = vst.msk [vmem:[#allocation4] sm:$0xff] %vm1270_vm8, %v1267_v51  ;;  %v1257_v54 = vadd.f32 %v2594_v52, %v1209_v50  ;;  %v2849_v50 = vld [vmem:[%s3724_s5 + $0x118] sm:$0xff]   ;;  %v2936_v52 = vmov 0.0  }
 0x2e7   :  { %v1268_v58 = vmax.f32 %v1257_v54, 0.0  ;;  %v2595_v59 = vpop.f32.mrf.mxu1  ;;  %v2850_v54 = vld [vmem:[%s3724_s5 + $0x110] sm:$0xff]  }
 0x2e9   :  { %1272 = vst.msk [vmem:[#allocation4 + $0x8] sm:$0xff] %vm1270_vm8, %v1268_v58  ;;  %v2596_v62 = vpop.f32.mrf.mxu1 }
 0x2ea   :  { %v2597_v0 = vadd.f32 %v2596_v62, %v2595_v59  ;;  %v2855_v59 = vld [vmem:[%s3726_s7 + $0x64] ss:$16 sps:$4 sm:$0xff]   ;;  %v2856_v62 = vld [vmem:[%s3726_s7 + $0x40] ss:$16 sps:$4 sm:$0xff]  }
 0x2eb   :  { %v2598_v3 = vpop.f32.mrf.mxu1 }
 0x2ec   :  { %v2452_v4 = vld.sshfl [vmem:[#allocation4 + $0x6] sm:$0x3 pattern:$0x76325410]  ;;  %v1291_v5 = vld [vmem:[#allocation4 + $0x4] sm:$0x3]  ;;  %v1262_v6 = vadd.f32 %v2597_v0, %v1214_v63 }
 0x2ed   :  { %1302 = vrot.lane.b32.xlu1 %v2452_v4, %s2933_s2  ;;  %v2451_v7 = vld.sshfl [vmem:[#allocation4 + $0x2] sm:$0x3 pattern:$0x76325410]  ;;  %1292 = vst.msk [vmem:[#allocation5 + $0x2] sm:$0x3] %vm1273_vm9, %v1291_v5  ;;  %v2599_v8 = vpop.f32.mrf.mxu1 }
 0x2ee   :  { %v1275_v53 = vld [vmem:[#allocation4] sm:$0x3]  ;;  %1286 = vrot.lane.b32.xlu0 %v2451_v7, %s2933_s2  ;;  %v1269_v9 = vmax.f32 %v1262_v6, 0.0  ;;  %v2861_v63 = vld [vmem:[%s3726_s7 + $0x24] ss:$16 sps:$4 sm:$0xff]   ;;  %v2877_v5 = vld [vmem:[%s3728_s9 + $0x78] sm:$0xff]  }
 0x2ef   :  { %1276 = vst.msk [vmem:[#allocation5] sm:$0x3] %vm1273_vm9, %v1275_v53  ;;  %v2859_v0 = vld [vmem:[%s3726_s7 + $0x20] ss:$16 sps:$4 sm:$0xff]   ;;  %v2867_v4 = vld [vmem:[%s3726_s7 + $0x6c] ss:$16 sps:$4 sm:$0xff]   ;;  %2650 = vmatprep.subr.bf16.mxu0 %v2877_v5 }
 0x2f0   :  { %v2454_v10 = vld.sshfl [vmem:[#allocation4 + $0xe] sm:$0x3 pattern:$0x76325410]  ;;  %v1321_v11 = vld [vmem:[#allocation4 + $0xc] sm:$0x3] }
 0x2f1   :  { %1274 = vst.msk [vmem:[#allocation4 + $0x10] sm:$0x3] %vm1273_vm9, %v1269_v9  ;;  %1332 = vrot.lane.b32.xlu1 %v2454_v10, %s2933_s2  ;;  %v2453_v12 = vld.sshfl [vmem:[#allocation4 + $0xa] sm:$0x3 pattern:$0x76325410] }
 0x2f2   :  { %1322 = vst.msk [vmem:[#allocation5 + $0x6] sm:$0x3] %vm1273_vm9, %v1321_v11  ;;  %v1306_v13 = vld [vmem:[#allocation4 + $0x8] sm:$0x3]  ;;  %1317 = vrot.lane.b32.xlu0 %v2453_v12, %s2933_s2  ;;  %v2862_v3 = vld [vmem:[%s3726_s7] ss:$16 sps:$4 sm:$0xff]  }
 0x2f3   :  { %1307 = vst.msk [vmem:[#allocation5 + $0x4] sm:$0x3] %vm1273_vm9, %v1306_v13  ;;  %v2878_v6 = vld [vmem:[%s3728_s9 + $0x38] sm:$0xff]   ;;  %v2879_v7 = vld [vmem:[%s3728_s9 + $0x70] sm:$0xff]   ;;  %v2881_v8 = vld [vmem:[%s3728_s9 + $0x68] sm:$0xff]  }
 0x2f4   :  { %2651 = vmatpush3.bf16.msra.mxu0 %v2878_v6  ;;  %v2880_v53 = vld [vmem:[%s3728_s9 + $0x30] sm:$0xff]   ;;  %v2882_v9 = vld [vmem:[%s3728_s9 + $0x28] sm:$0xff]   ;;  %v2883_v10 = vld [vmem:[%s3728_s9 + $0x60] sm:$0xff]  }
 0x2f5   :  { %2652 = vmatprep.subr.bf16.mxu0 %v2879_v7  ;;  %v2884_v11 = vld [vmem:[%s3728_s9 + $0x20] sm:$0xff]   ;;  %v2885_v12 = vld [vmem:[%s3728_s9 + $0x58] sm:$0xff]  }
 0x2f6   :  { %v2886_v13 = vld [vmem:[%s3728_s9 + $0x18] sm:$0xff]  }
 0x2f8   :  { %v1336_v15 = vld [vmem:[#allocation4 + $0x10] sm:$0x3]  ;;  %2653 = vmatpush3.bf16.msra.mxu0 %v2880_v53 }
 0x2f9   :  { %1337 = vst.msk [vmem:[#allocation5 + $0x8] sm:$0x3] %vm1273_vm9, %v1336_v15  ;;  %2654 = vmatprep.subr.bf16.mxu0 %v2881_v8  ;;  %v2888_v15 = vld [vmem:[%s3728_s9 + $0x10] sm:$0xff]  }
 0x2fc   :  { %2655 = vmatpush3.bf16.msra.mxu0 %v2882_v9 }
 0x2fd   :  { %2656 = vmatprep.subr.bf16.mxu0 %v2883_v10 }
 0x300   :  { %v2455_v57 = vld.sshfl [vmem:[#allocation5 + $0x8] sm:$0x3 pattern:$0x76325410]  ;;  %2657 = vmatpush3.bf16.msra.mxu0 %v2884_v11 }
 0x301   :  { %v1375_v58 = vpack.c.bf16 %v2455_v57, %v2455_v57  ;;  %2658 = vmatprep.subr.bf16.mxu0 %v2885_v12  ;;  %v2902_v57 = vld [vmem:[%s3728_s9 + $0x98] sm:$0xff]  }
 0x304   :  { %2659 = vmatpush3.bf16.msra.mxu0 %v2886_v13 }
 0x305   :  { %2660 = vmatprep.subr.bf16.mxu0 %v2887_v14 }
 0x308   :  { %2661 = vmatpush3.bf16.msra.mxu0 %v2888_v15  ;;  %v1824_v15 = vsub.s32 2, %v3494_v24 }
 0x35f   :  { %v1303_v16 = vpop.permute.xlu1 %1302 }
 0x360   :  { %1305 = vst.msk [vmem:[#allocation5 + $0x2] sm:$0x3] %vm1289_vm10, %v1303_v16  ;;  %v1287_v17 = vpop.permute.xlu0 %1286  ;;  %v2889_v16 = vld [vmem:[%s3728_s9 + $0x48] sm:$0xff]  }
 0x361   :  { %1290 = vst.msk [vmem:[#allocation5] sm:$0x3] %vm1289_vm10, %v1287_v17  ;;  %v2890_v17 = vld [vmem:[%s3728_s9 + $0x8] sm:$0xff]   ;;  %2662 = vmatprep.subr.bf16.mxu0 %v2889_v16  ;;  %v1828_v16 = vsub.s32 3, %v3494_v24 }
 0x362   :  { %2663 = vmatpush3.bf16.msra.mxu0 %v2890_v17 }
 0x363   :  { %v1333_v21 = vpop.permute.xlu1 %1332 }
 0x364   :  { %1335 = vst.msk [vmem:[#allocation5 + $0x6] sm:$0x3] %vm1289_vm10, %v1333_v21  ;;  %v1318_v22 = vpop.permute.xlu0 %1317 }
 0x365   :  { %1320 = vst.msk [vmem:[#allocation5 + $0x4] sm:$0x3] %vm1289_vm10, %v1318_v22 }
 0x36c   :  { %v1338_v26 = vld [vmem:[#allocation5] sm:$0xff] }
 0x36d   :  { %v1349_v27 = vrot.slane %v1338_v26, %v1348_v25  ;;  %v1342_v28 = vcombine.high %v1338_v26, %v1338_v26 }
 0x36f   :  { %v1357_v29 = vcombine.high %v1349_v27, %v1349_v27  ;;  %v1356_v30 = vrot.slane %v1342_v28, %v1348_v25  ;;  %v1371_v34 = vpack.c.bf16 %v1349_v27, %v1349_v27  ;;  %v2456_v28 = vld [vmem:[%s3725_s6] ss:$0 sm:$0xff] }
 0x371   :  { %v1372_v31 = vpack.c.bf16 %v1357_v29, %v1357_v29  ;;  %v1358_v33 = vcombine.high %v1356_v30, %v1356_v30  ;;  %v1373_v51 = vpack.c.bf16 %v1356_v30, %v1356_v30 }
 0x373   :  { %1706 = vmatprep.mubr.bf16.mxu1 %v1372_v31  ;;  %v1374_v36 = vpack.c.bf16 %v1358_v33, %v1358_v33 }
 0x374   :  { %1707 = vmatmul.mubr.bf16.vlgmr.msra.gmra.mxu1 %v1371_v34 }
 0x375   :  { %2624 = vmatpush3.bf16.msra.mxu1 %v2833_v32  ;;  %1746 = vmatprep.mubr.bf16.mxu1 %v1374_v36 }
 0x376   :  { %2625 = vmatprep.subr.bf16.mxu1 %v2835_v35 }
 0x379   :  { %2626 = vmatpush3.bf16.msra.mxu1 %v2836_v37  ;;  %v2865_v37 = vld [vmem:[%s3726_s7 + $0x68] ss:$16 sps:$4 sm:$0xff]  }
 0x37a   :  { %2627 = vmatprep.subr.bf16.mxu1 %v2837_v38 }
 0x37d   :  { %2628 = vmatpush3.bf16.msra.mxu1 %v2838_v39  ;;  %v2870_v39 = vld [vmem:[%s3726_s7 + $0x4c] ss:$16 sps:$4 sm:$0xff]  }
 0x37e   :  { %2629 = vmatprep.subr.bf16.mxu1 %v2839_v40 }
 0x381   :  { %2630 = vmatpush3.bf16.msra.mxu1 %v2840_v41  ;;  %v2868_v41 = vld [vmem:[%s3726_s7 + $0x48] ss:$16 sps:$4 sm:$0xff]  }
 0x382   :  { %2631 = vmatprep.subr.bf16.mxu1 %v2841_v42  ;;  %v2873_v42 = vld [vmem:[%s3726_s7 + $0x2c] ss:$16 sps:$4 sm:$0xff]  }
 0x385   :  { %2632 = vmatpush3.bf16.msra.mxu1 %v2842_v43  ;;  %v2871_v43 = vld [vmem:[%s3726_s7 + $0x28] ss:$16 sps:$4 sm:$0xff]  }
 0x386   :  { %2633 = vmatprep.subr.bf16.mxu1 %v2843_v44  ;;  %v2876_v44 = vld [vmem:[%s3726_s7 + $0xc] ss:$16 sps:$4 sm:$0xff]  }
 0x389   :  { %2634 = vmatpush3.bf16.msra.mxu1 %v2844_v45  ;;  %v2891_v45 = vld [vmem:[%s3728_s9 + $0xf8] sm:$0xff]  }
 0x38a   :  { %2635 = vmatprep.subr.bf16.mxu1 %v2845_v46  ;;  %v2892_v46 = vld [vmem:[%s3728_s9 + $0xb8] sm:$0xff]  }
 0x38d   :  { %2636 = vmatpush3.bf16.msra.mxu1 %v2846_v47  ;;  %v2893_v47 = vld [vmem:[%s3728_s9 + $0xf0] sm:$0xff]  }
 0x38e   :  { %2637 = vmatprep.subr.bf16.mxu1 %v2847_v48  ;;  %v2894_v48 = vld [vmem:[%s3728_s9 + $0xb0] sm:$0xff]  }
 0x391   :  { %2638 = vmatpush3.bf16.msra.mxu1 %v2848_v49  ;;  %v2895_v49 = vld [vmem:[%s3728_s9 + $0xe8] sm:$0xff]  }
 0x392   :  { %2694 = vmatprep.subr.bf16.mxu1 %v2936_v52 }
 0x394   :  { %1747 = vmatmul.mubr.bf16.vlgmr.msra.gmra.mxu1 %v1373_v51  ;;  %v2899_v51 = vld [vmem:[%s3728_s9 + $0xe0] sm:$0xff]  }
 0x395   :  { %2695 = vmatpush3.bf16.msra.mxu1 %v2849_v50  ;;  %2702 = vmatprep.mubr.msk.bf16.mxu1 %vm2937_vm11, %v2936_v52  ;;  %v2896_v50 = vld [vmem:[%s3728_s9 + $0xa8] sm:$0xff]  }
 0x396   :  { %2696 = vmatprep.subr.bf16.mxu1 %v2936_v52 }
 0x399   :  { %2697 = vmatpush3.bf16.msra.mxu1 %v2850_v54  ;;  %v2900_v54 = vld [vmem:[%s3728_s9 + $0xa0] sm:$0xff]  }
 0x39a   :  { %2698 = vmatprep.subr.bf16.mxu1 %v2936_v52 }
 0x39d   :  { %2699 = vmatpush3.bf16.msra.mxu1 %v2851_v55  ;;  %v2898_v55 = vld [vmem:[%s3728_s9] sm:$0xff]  }
 0x39e   :  { %2700 = vmatprep.subr.bf16.mxu1 %v2936_v52  ;;  %v2897_v52 = vld [vmem:[%s3728_s9 + $0x40] sm:$0xff]  }
 0x39f   :  { %2664 = vmatprep.subr.bf16.mxu0 %v2897_v52 }
 0x3a0   :  { %2665 = vmatpush3.bf16.msra.mxu0 %v2898_v55 }
 0x3a1   :  { %2701 = vmatpush3.bf16.msra.mxu1 %v2852_v56  ;;  %v2901_v56 = vld [vmem:[%s3728_s9 + $0xd8] sm:$0xff]  }
 0x3a2   :  { %1925 = vmatprep.subr.bf16.mxu1 %v2855_v59  ;;  %v2904_v59 = vld [vmem:[%s3728_s9 + $0x90] sm:$0xff]  }
 0x3a4   :  { %2703 = vmatmul.mubr.msk.bf16.vlgmr.msra.gmra.mxu1 %vm1270_vm8, %v1375_v58  ;;  %v2903_v58 = vld [vmem:[%s3728_s9 + $0xd0] sm:$0xff]  }
 0x3a5   :  { %1949 = vmatprep.mubr.bf16.mxu1 %v2931_v1  ;;  %1926 = vmatpush1.bf16.msra.mxu1 %v2853_v60  ;;  %v2905_v60 = vld [vmem:[%s3728_s9 + $0xc8] sm:$0xff]  }
 0x3a6   :  { %1927 = vmatprep.subr.bf16.mxu1 %v2858_v61  ;;  %v2906_v61 = vld [vmem:[%s3728_s9 + $0x88] sm:$0xff]  }
 0x3a9   :  { %1928 = vmatpush1.bf16.msra.mxu1 %v2856_v62  ;;  %v2907_v62 = vld [vmem:[%s3728_s9 + $0xc0] sm:$0xff]  }
 0x3aa   :  { %1929 = vmatprep.subr.bf16.mxu1 %v2861_v63  ;;  %v2908_v63 = vld [vmem:[%s3728_s9 + $0x80] sm:$0xff]  }
 0x3ad   :  { %1930 = vmatpush1.bf16.msra.mxu1 %v2859_v0  ;;  %v1816_v0 = vsub.s32 0, %v3494_v24 }
 0x3ae   :  { %1931 = vmatprep.subr.bf16.mxu1 %v2864_v2  ;;  %v1812_v2 = vld [vmem:[%s3727_s8] sm:$0xf] }
 0x3af   :  { %v1825_v17 = vrot.slane %v1812_v2, %v1824_v15 }
 0x3b1   :  { %1932 = vmatpush1.bf16.msra.mxu1 %v2862_v3  ;;  %v1820_v3 = vsub.s32 1, %v3494_v24  ;;  %v2512_v24 = vld [vmem:[%s3729_s10] ss:$0 sm:$0xff] }
 0x3b2   :  { %1966 = vmatprep.subr.bf16.mxu1 %v2867_v4  ;;  %v1817_v4 = vrot.slane %v1812_v2, %v1816_v0 }
 0x3b3   :  { %v1821_v5 = vrot.slane %v1812_v2, %v1820_v3 }
 0x434   :  { %v2617_v18 = vpop.f32.mrf.mxu1 }
 0x436   :  { %v2618_v19 = vpop.f32.mrf.mxu1 }
 0x437   :  { %v2619_v27 = vadd.f32 %v2618_v19, %v2617_v18  ;;  %v1829_v18 = vrot.slane %v1812_v2, %v1828_v16 }
 0x438   :  { %v2620_v20 = vpop.f32.mrf.mxu1 }
 0x439   :  { %v1709_v30 = vadd.f32 %v2619_v27, %v2456_v28 }
 0x43a   :  { %v2621_v21 = vpop.f32.mrf.mxu1 }
 0x454   :  { %v2639_v22 = vpop.f32.mrf.mxu1 }
 0x456   :  { %v2640_v23 = vpop.f32.mrf.mxu1 }
 0x457   :  { %v2641_v29 = vadd.f32 %v2640_v23, %v2639_v22 }
 0x458   :  { %v2642_v25 = vpop.f32.mrf.mxu1 }
 0x459   :  { %v1749_v31 = vadd.f32 %v2641_v29, %v1709_v30 }
 0x45a   :  { %v2643_v26 = vpop.f32.mrf.mxu1 }
 0x464   :  { %v1788_v32 = vpop.f32.mrf.mxu1 }
 0x465   :  { %v1789_v33 = vadd.f32 %v1788_v32, %v1749_v31 }
 0x466   :  { %v2704_v34 = vpop.f32.mrf.mxu1 }
 0x467   :  { %v1794_v35 = vmax.f32 %v1789_v33, 0.0 }
 0x468   :  { %v1791_v36 = vpop.f32.mrf.mxu1 }
 0x469   :  { %v1795_v38 = vpack.c.bf16 %v1794_v35, %v1794_v35 }
 0x46a   :  { %v2705_v40 = vpop.f32.mrf.mxu1 }
 0x46b   :  { %2510 = vmatmul.mubr.msk.bf16.vlgmr.msra.gmra.mxu1 %vm1270_vm8, %v1795_v38 }
 0x46c   :  { %1967 = vmatpush1.bf16.msra.mxu1 %v2865_v37  ;;  %1990 = vmatprep.mubr.bf16.mxu1 %v2931_v1  ;;  %v2874_v1 = vld [vmem:[%s3726_s7 + $0x8] ss:$16 sps:$4 sm:$0xff]  }
 0x46d   :  { %1968 = vmatprep.subr.bf16.mxu1 %v2870_v39 }
 0x470   :  { %1969 = vmatpush1.bf16.msra.mxu1 %v2868_v41 }
 0x471   :  { %1970 = vmatprep.subr.bf16.mxu1 %v2873_v42 }
 0x474   :  { %1971 = vmatpush1.bf16.msra.mxu1 %v2871_v43 }
 0x475   :  { %1972 = vmatprep.subr.bf16.mxu1 %v2876_v44 }
 0x478   :  { %1973 = vmatpush1.bf16.msra.mxu1 %v2874_v1 }
 0x479   :  { %2672 = vmatprep.subr.bf16.mxu1 %v2891_v45 }
 0x47b   :  { %2511 = vmatmul.mubr.msk.bf16.vlgmr.msra.gmra.mxu1 %vm1270_vm8, %v1795_v38 }
 0x47c   :  { %2673 = vmatpush3.bf16.msra.mxu1 %v2892_v46 }
 0x47d   :  { %2674 = vmatprep.subr.bf16.mxu1 %v2893_v47 }
 0x480   :  { %2675 = vmatpush3.bf16.msra.mxu1 %v2894_v48 }
 0x481   :  { %2676 = vmatprep.subr.bf16.mxu1 %v2895_v49 }
 0x484   :  { %2677 = vmatpush3.bf16.msra.mxu1 %v2896_v50 }
 0x485   :  { %2678 = vmatprep.subr.bf16.mxu1 %v2899_v51 }
 0x488   :  { %2679 = vmatpush3.bf16.msra.mxu1 %v2900_v54 }
 0x489   :  { %2680 = vmatprep.subr.bf16.mxu1 %v2901_v56 }
 0x48c   :  { %2681 = vmatpush3.bf16.msra.mxu1 %v2902_v57 }
 0x48d   :  { %2682 = vmatprep.subr.bf16.mxu1 %v2903_v58 }
 0x490   :  { %2683 = vmatpush3.bf16.msra.mxu1 %v2904_v59 }
 0x491   :  { %2684 = vmatprep.subr.bf16.mxu1 %v2905_v60 }
 0x494   :  { %2685 = vmatpush3.bf16.msra.mxu1 %v2906_v61 }
 0x495   :  { %2686 = vmatprep.subr.bf16.mxu1 %v2907_v62 }
 0x498   :  { %2687 = vmatpush3.bf16.msra.mxu1 %v2908_v63 }
 0x52b   :  { %v1951_v6 = vpop.f32.mrf.mxu1 }
 0x52c   :  { %v1952_v7 = vadd.f32 %v1951_v6, %v1817_v4 }
 0x52d   :  { %v1953_v53 = vpop.f32.mrf.mxu1 }
 0x52e   :  { %v1954_v8 = vadd.f32 %v1953_v53, %v1821_v5  ;;  %v1999_v9 = vmax.f32 %v1952_v7, 0.0 }
 0x52f   :  { %v1955_v10 = vpop.f32.mrf.mxu1 }
 0x530   :  { %v2000_v11 = vmax.f32 %v1954_v8, 0.0  ;;  %v2003_v14 = vpack.c.bf16 %v1999_v9, %v1999_v9 }
 0x531   :  { %v1956_v12 = vpop.f32.mrf.mxu1 }
 0x532   :  { %v2004_v13 = vpack.c.bf16 %v2000_v11, %v2000_v11 }
 0x534   :  { %2302 = vmatprep.mubr.bf16.mxu0 %v2004_v13 }
 0x535   :  { %2303 = vmatmul.mubr.bf16.vlgmr.msra.gmra.mxu0 %v2003_v14 }
 0x53b   :  { %v1992_v19 = vpop.f32.mrf.mxu1 }
 0x53c   :  { %v1993_v20 = vadd.f32 %v1992_v19, %v1825_v17 }
 0x53d   :  { %v1994_v21 = vpop.f32.mrf.mxu1 }
 0x53e   :  { %v1995_v22 = vadd.f32 %v1994_v21, %v1829_v18  ;;  %v2001_v23 = vmax.f32 %v1993_v20, 0.0 }
 0x53f   :  { %v1996_v25 = vpop.f32.mrf.mxu1 }
 0x540   :  { %v2002_v26 = vmax.f32 %v1995_v22, 0.0  ;;  %v2005_v29 = vpack.c.bf16 %v2001_v23, %v2001_v23 }
 0x541   :  { %v1997_v27 = vpop.f32.mrf.mxu1 }
 0x542   :  { %v2006_v28 = vpack.c.bf16 %v2002_v26, %v2002_v26 }
 0x544   :  { %2342 = vmatprep.mubr.bf16.mxu1 %v2006_v28 }
 0x545   :  { %2343 = vmatmul.mubr.bf16.vlgmr.msra.gmra.mxu1 %v2005_v29 }
 0x5f5   :  { %v2666_v30 = vpop.f32.mrf.mxu0 }
 0x5f7   :  { %v2667_v31 = vpop.f32.mrf.mxu0 }
 0x5f8   :  { %v2668_v34 = vadd.f32 %v2667_v31, %v2666_v30 }
 0x5f9   :  { %v2669_v32 = vpop.f32.mrf.mxu0 }
 0x5fa   :  { %v2305_v37 = vadd.f32 %v2668_v34, %v2512_v24 }
 0x5fb   :  { %v2670_v33 = vpop.f32.mrf.mxu0 }
 0x605   :  { %v2688_v35 = vpop.f32.mrf.mxu1 }
 0x607   :  { %v2689_v36 = vpop.f32.mrf.mxu1 }
 0x608   :  { %v2690_v38 = vadd.f32 %v2689_v36, %v2688_v35 }
 0x609   :  { %v2691_v39 = vpop.f32.mrf.mxu1 }
 0x60a   :  { %v2345_v40 = vadd.f32 %v2690_v38, %v2305_v37 }
 0x60b   :  { %v2692_v41 = vpop.f32.mrf.mxu1 }
 0x60c   :  { %2350 = vst [vmem:[#allocation6] sm:$0x3] %v2345_v40 }
 0x60d   :  { %2920 = shalt.err (!%p2917_p4)
}
 0x60e   :  { %2360 = dma.vmem_to_hbm [thread:$0]  %s2358_s3, 32, %s3730_s11, [#allocation7]  }
 0x60f   :  { %2929 = dma.done.wait [#allocation7], 32  }
 0x610   :  { %2930 = vsyncadd [#allocation7], 4294967264 }
 0x611   :  { %2364 = vsyncpa [#allocation7], 1 }

</bundles_post_ra>
